<compile_context>
chip_gen: v7x
topology: tpu7x:2x2x1
jax: 0.10.0
libtpu: 0.0.40
codegen_flags: <defaults>
</compile_context>

<pallas_src>
import jax
import jax.numpy as jnp
from jax.experimental import pallas as pl
from jax.experimental.pallas import tpu as pltpu


# ----------------------------- fused Pallas kernel -----------------------------

def _lenet_fused_kernel(
        xcat_ref,                   # (B*24, 140)          im2col'd input (over kh)
        t1_ref,                     # (140, C1*24)         conv1 banded weights (kh along K)
        pc1_ref,                    # (C1*24, 2*C1*12)     pool1 fused even|odd column selector
        pr1_ref,                    # (2*B*12, B*24)       pool1 fused even/odd row selector
        sw_ref,                     # (N*12, C1*12)        switch * bn1 scale (per element)
        t2_ref,                     # (5*C1*12, C2*8)      conv2 banded weights (kh along K)
        pc2_ref,                    # (C2*8, 2*C2*4)       pool2 fused column selector
        pr2_ref,                    # (2*N*4, N*12)        pool2 fused row selector (+row select)
        mr3_ref,                    # (B, N*4)             (mean over samples) ∘ (flatten rows)
        w5_ref,                     # (4*C2*4, FC1)        fc5 weight (K-concatenated)
        w6_ref,                     # (FC1, FC2)
        w7_ref,                     # (FC2, 10)
        c_ref,                      # (8, 128)             packed bias/shift/scale rows
        out_ref):                   # (B, 10)
    def mm(a, b):
        return jnp.dot(a, b, preferred_element_type=jnp.float32)

    c = c_ref[...]
    n1 = t1_ref.shape[1]            # C1*24
    p1w = pc1_ref.shape[1] // 2     # C1*12
    n2 = t2_ref.shape[1]            # C2*8
    p2w = pc2_ref.shape[1] // 2     # C2*4

    # ---- c1: one MXU matmul on the im2col'd input ----
    y1 = mm(xcat_ref[...], t1_ref[...]) + c[0:1, :n1]              # (B*24, C1*24)

    # ---- s2: 2x2 max-pool (fused even|odd selectors) + ReLU ----
    z1 = mm(y1, pc1_ref[...])                                      # (B*24, 2*C1*12)
    zc1 = jnp.maximum(z1[:, :p1w], z1[:, p1w:])
    zr1 = mm(pr1_ref[...], zc1)                                    # (2*B*12, C1*12)
    h1r = zr1.shape[0] // 2
    p1 = jnp.maximum(jnp.maximum(zr1[:h1r], zr1[h1r:]), 0.0)       # (B*12, C1*12)

    # ---- switch expansion over samples (pure replication) + bn1 affine ----
    # switch samples are in [0,1] so scaling commutes exactly with pool/ReLU.
    S = sw_ref.shape[0] // p1.shape[0]
    a2 = jnp.concatenate([p1] * S, axis=0) * sw_ref[...] + c[1:2, :p1w]   # (N*12, C1*12)

    # ---- c3: sublane rolls (XLU) + lane concat + ONE weight matmul ----
    # roll by (rows-kh) == jnp.roll(a2, -kh): row r of the rolled copy is a2[r+kh];
    # kh<=4 and only rows 0..7 of each 12-row group are ever selected downstream,
    # so the wrap-around rows are never used.
    rows2 = a2.shape[0]
    a2cat = jnp.concatenate(
        [a2] + [pltpu.roll(a2, rows2 - kh, axis=0) for kh in range(1, 5)], axis=1)
    y2 = mm(a2cat, t2_ref[...]) + c[2:3, :n2]                      # (N*12, C2*8)

    # ---- s4: pool + ReLU, then bn2 affine (literal reference order) ----
    z2 = mm(y2, pc2_ref[...])                                      # (N*12, 2*C2*4)
    zc2 = jnp.maximum(z2[:, :p2w], z2[:, p2w:])
    zr2 = mm(pr2_ref[...], zc2)                                    # (2*N*4, C2*4)
    h2r = zr2.shape[0] // 2
    p2 = jnp.maximum(jnp.maximum(zr2[:h2r], zr2[h2r:]), 0.0)       # (N*4, C2*4)
    a3 = p2 * c[3:4, :p2w] + c[4:5, :p2w]                          # bn2 scale/shift

    # ---- flatten via rolls + folded (mean ∘ row-select) + fc5 / f6 / f7 ----
    rows3 = a3.shape[0]
    a3cat = jnp.concatenate(
        [a3] + [pltpu.roll(a3, rows3 - ip, axis=0) for ip in range(1, 4)], axis=1)  # (N*4, 4*C2*4)
    xf = mm(mr3_ref[...], a3cat)                                   # (B, 4*C2*4)
    fcn1 = w5_ref.shape[1]
    fcn2 = w6_ref.shape[1]
    nout = w7_ref.shape[1]
    g1 = mm(xf, w5_ref[...]) + c[5:6, :fcn1]                       # (B, FC1)
    g2 = mm(g1, w6_ref[...]) + c[6:7, :fcn2]                       # (B, FC2)
    out_ref[...] = mm(g2, w7_ref[...]) + c[7:8, :nout]             # (B, 10)


# ----------------------------- host-side operand prep -----------------------------

def _build_operands(params, x, sstackT):
    f32, bf16 = jnp.float32, jnp.bfloat16
    B = x.shape[0]
    C1 = params['w1'].shape[0]
    C2 = params['w3'].shape[0]
    FC1 = params['w5'].shape[1]
    FC2 = params['w6'].shape[1]
    S = sstackT.shape[0]
    N = S * B

    # ---- conv1: host-side im2col over kh (tiny; XLA fuses it) ----
    xi = x.reshape(B, 28, 28).astype(f32)
    xcat = jnp.concatenate([xi[:, kh:kh + 24, :] for kh in range(5)],
                           axis=2).reshape(B * 24, 5 * 28)

    # conv1 banded weights, kh-concatenated along K:
    #   t1cat[kh*28 + v, c*24 + j] = w1[c, 0, kh, v-j]   for 0 <= v-j <= 4
    vv = jnp.arange(28)[:, None]
    jj = jnp.arange(24)[None, :]
    d = vv - jj
    valid = (d >= 0) & (d <= 4)
    g = params['w1'][:, 0, :, :][..., jnp.clip(d, 0, 4)]           # (C1, 5, 28, 24)
    g = jnp.where(valid[None, None], g, 0.0)
    t1cat = jnp.transpose(g, (1, 2, 0, 3)).reshape(5 * 28, C1 * 24).astype(f32)

    # ---- fused even|odd pooling selectors (0/1 -> exact in bf16) ----
    def pool_col_sel(C, w_in, w_out):          # (C*w_in, 2*C*w_out)
        ci = jnp.arange(C * w_in)
        co = jnp.arange(C * w_out)
        def sel(par):
            return ((ci[:, None] // w_in == co[None, :] // w_out) &
                    (ci[:, None] % w_in == 2 * (co[None, :] % w_out) + par))
        return jnp.concatenate([sel(0), sel(1)], axis=1).astype(bf16)

    def pool_row_sel(G, h_in, h_out):          # (2*G*h_out, G*h_in)
        ro = jnp.arange(G * h_out)
        ri = jnp.arange(G * h_in)
        def sel(par):
            return ((ro[:, None] // h_out == ri[None, :] // h_in) &
                    (ri[None, :] % h_in == 2 * (ro[:, None] % h_out) + par))
        return jnp.concatenate([sel(0), sel(1)], axis=0).astype(bf16)

    pc1 = pool_col_sel(C1, 24, 12)
    pr1 = pool_row_sel(B, 24, 12)
    pc2 = pool_col_sel(C2, 8, 4)
    # pool2 row selector reads directly from the un-row-selected conv2 output
    # (12 rows per sample group, rows 0..7 are the valid conv outputs); this also
    # folds the conv2 output-row selection into this single matmul.
    pr2 = pool_row_sel(N, 12, 4)

    # per-element scale = switch sample s_{s,c} * bn1 gamma/sqrt(var+eps)
    sc = (sstackT * params['bn1_scale'][None, :]).astype(f32)      # (S, C1)
    sw = jnp.broadcast_to(sc[:, None, :, None],
                          (S, B * 12, C1, 12)).reshape(N * 12, C1 * 12)

    # conv2 banded weights, kh-concatenated along K (no bn2 fold -> exact for any gamma)
    vv2 = jnp.arange(12)[:, None]
    jj2 = jnp.arange(8)[None, :]
    d2 = vv2 - jj2
    valid2 = (d2 >= 0) & (d2 <= 4)
    g2 = params['w3'][:, :, :, jnp.clip(d2, 0, 4)]                 # (C2, C1, 5, 12, 8)
    g2 = jnp.where(valid2[None, None, None], g2, 0.0)
    t2cat = jnp.transpose(g2, (2, 1, 3, 0, 4)).reshape(5 * C1 * 12, C2 * 8).astype(f32)

    # fc: fold (mean over samples) ∘ (flatten row-selection) into one tiny matrix.
    # Exact because fc5/f6/f7 have no nonlinearity and each mean row sums to 1.
    # Reproduces the reference's literal reshape(BATCH_SIZE, num_samps, -1).mean(1)
    # applied to (sample, batch)-ordered rows (n = s*B + b).
    cols3 = jnp.arange(N * 4)
    sel_rows = (jnp.arange(B)[:, None] * S + jnp.arange(S)[None, :]) * 4     # (B, S)
    mr3 = (cols3[None, None, :] == sel_rows[:, :, None]).astype(f32).sum(1) / S

    # fc5 weight in the a3cat column layout: row = ip*(C2*4) + c*4 + jc
    w5cat = jnp.transpose(params['w5'].reshape(C2, 4, 4, FC1),
                          (1, 0, 2, 3)).reshape(4 * C2 * 4, FC1).astype(f32)
    w6 = params['w6'].astype(f32)
    w7 = params['w7'].astype(f32)

    # ---- all per-column bias / shift / scale rows packed into ONE operand ----
    L = max(C1 * 24, C2 * 8, FC1, FC2, 10)
    L = ((L + 127) // 128) * 128
    def rowpad(v):
        v = v.astype(f32).reshape(-1)
        return jnp.pad(v, (0, L - v.shape[0]))
    consts = jnp.stack([
        rowpad(jnp.repeat(params['b1'], 24)),          # 0: conv1 bias per column
        rowpad(jnp.repeat(params['bn1_shift'], 12)),   # 1: bn1 shift per column
        rowpad(jnp.repeat(params['b3'], 8)),           # 2: conv2 bias per column
        rowpad(jnp.repeat(params['bn2_scale'], 4)),    # 3: bn2 scale per column
        rowpad(jnp.repeat(params['bn2_shift'], 4)),    # 4: bn2 shift per column
        rowpad(params['b5']),                          # 5: fc5 bias
        rowpad(params['b6']),                          # 6: fc6 bias
        rowpad(params['b7']),                          # 7: fc7 bias
    ], axis=0)

    return [xcat, t1cat, pc1, pr1, sw, t2cat, pc2, pr2, mr3, w5cat, w6, w7, consts]


# ----------------------------- params & forward -----------------------------

def softplus(x):
    return jnp.logaddexp(x, 0.0)


def softplus_inverse(y):
    return y + jnp.log(-jnp.expm1(-y))


def init_params(key, c1, c2, fc1, fc2):
    ks = jax.random.split(key, 10)

    def u(k, shape, fan_in):
        bound = 1.0 / jnp.sqrt(jnp.float32(fan_in))
        return jax.random.uniform(k, shape, jnp.float32, -bound, bound)

    p = {}
    p['w1'] = u(ks[0], (c1, 1, 5, 5), 1 * 25)
    p['b1'] = u(ks[1], (c1,), 1 * 25)
    p['w3'] = u(ks[2], (c2, c1, 5, 5), c1 * 25)
    p['b3'] = u(ks[3], (c2,), c1 * 25)
    # Linear weights stored as (in, out); PyTorch nn.Linear stores (out, in).
    p['w5'] = u(ks[4], (c2 * 4 * 4, fc1), c2 * 16)
    p['b5'] = u(ks[5], (fc1,), c2 * 16)
    p['w6'] = u(ks[6], (fc1, fc2), fc1)
    p['b6'] = u(ks[7], (fc2,), fc1)
    p['w7'] = u(ks[8], (fc2, 10), fc2)
    p['b7'] = u(ks[9], (10,), fc2)
    # switch parameters (layer='c1' -> hidden_dims['c1'] = c1), as in __init__
    p['alpha'] = -1.0 * jnp.ones((c1,), jnp.float32)
    i = jnp.arange(c1, dtype=jnp.float32)
    p['beta'] = softplus_inverse((c1 - i) * softplus(jnp.float32(-1.0)))
    # BatchNorm inference params (PyTorch default init)
    eps = 1e-5
    for name, ch in (('bn1', c1), ('bn2', c2)):
        gamma = jnp.ones((ch,), jnp.float32)
        beta_ = jnp.zeros((ch,), jnp.float32)
        rmean = jnp.zeros((ch,), jnp.float32)
        rvar = jnp.ones((ch,), jnp.float32)
        scale = gamma / jnp.sqrt(rvar + eps)
        p[name + '_scale'] = scale
        p[name + '_shift'] = beta_ - rmean * scale
    return p


def lenet_forward(params, x, sample_key, num_samps, layer='c1'):
    if layer != 'c1':
        # TODO(synk): only the module's configured layer='c1' switch path is implemented.
        raise NotImplementedError("only layer='c1' is implemented")

    B = x.shape[0]

    # switch construction: Beta rsample + stick-breaking (tiny (C1, S) tensors, JAX glue)
    phi_alpha = softplus(params['alpha'])
    phi_beta = softplus(params['beta'])
    alpha_param = jnp.repeat(phi_alpha[:, None], num_samps, axis=1)
    beta_param = jnp.repeat(phi_beta[:, None], num_samps, axis=1)
    v = jax.random.beta(sample_key, alpha_param, beta_param)          # (C1, S)
    rcum = jnp.concatenate(
        [jnp.ones((1, num_samps), v.dtype), jnp.cumprod(1.0 - v, axis=0)[:-1]], axis=0)
    sstackT = (v * rcum).T                                            # (S, C1), values in [0, 1]

    ops = _build_operands(params, x, sstackT)
    vmem_spec = pl.BlockSpec(memory_space=pltpu.MemorySpace.VMEM)
    out = pl.pallas_call(
        _lenet_fused_kernel,
        out_shape=jax.ShapeDtypeStruct((B, 10), jnp.float32),
        in_specs=[vmem_spec] * len(ops),
        out_specs=vmem_spec,
    )(*ops)
    return out, phi_alpha, phi_beta


# ----------------------------------- main -----------------------------------

if __name__ == "__main__":
    key = jax.random.PRNGKey(0)
    pk, xk, sk = jax.random.split(key, 3)

    C1, C2, FC1, FC2 = 4, 8, 16, 8    # nodesNum1, nodesNum2, nodesFc1, nodesFc2 (small)
    NUM_SAMPS = 5
    B = 2                              # acts as BATCH_SIZE for the final reshape

    params = init_params(pk, C1, C2, FC1, FC2)
    x = jax.random.normal(xk, (B, 1, 28, 28), jnp.float32)   # 28x28 required by the 4x4 flatten

    fwd = jax.jit(lenet_forward, static_argnames=('num_samps', 'layer'))
    out, phi_a, phi_b = fwd(params, x, sk, num_samps=NUM_SAMPS, layer='c1')
    jax.block_until_ready((out, phi_a, phi_b))
    assert out.shape == (B, 10) and phi_a.shape == (C1,) and phi_b.shape == (C1,)
    print("KERNEL_OK")
</pallas_src>

<mosaic_0001>
module attributes {stable_mosaic.version = 11 : i64} {
  func.func @_lenet_fused_kernel(%arg0: memref<48x140xf32, #tpu.memory_space<vmem>>, %arg1: memref<140x96xf32, #tpu.memory_space<vmem>>, %arg2: memref<96x96xbf16, #tpu.memory_space<vmem>>, %arg3: memref<48x48xbf16, #tpu.memory_space<vmem>>, %arg4: memref<120x48xf32, #tpu.memory_space<vmem>>, %arg5: memref<240x64xf32, #tpu.memory_space<vmem>>, %arg6: memref<64x64xbf16, #tpu.memory_space<vmem>>, %arg7: memref<80x120xbf16, #tpu.memory_space<vmem>>, %arg8: memref<2x40xf32, #tpu.memory_space<vmem>>, %arg9: memref<128x16xf32, #tpu.memory_space<vmem>>, %arg10: memref<16x8xf32, #tpu.memory_space<vmem>>, %arg11: memref<8x10xf32, #tpu.memory_space<vmem>>, %arg12: memref<8x128xf32, #tpu.memory_space<vmem>>, %arg13: memref<2x10xf32, #tpu.memory_space<vmem>>) attributes {dimension_semantics = [], scalar_prefetch = 0 : i64, scratch_operands = 0 : i64, tpu.core_type = #tpu.core_type<tc>} {
    %c0 = arith.constant 0 : index
    %c0_0 = arith.constant 0 : index
    %0 = vector.load %arg12[%c0, %c0_0] : memref<8x128xf32, #tpu.memory_space<vmem>>, vector<8x128xf32>
    %c0_1 = arith.constant 0 : index
    %c0_2 = arith.constant 0 : index
    %1 = vector.load %arg0[%c0_1, %c0_2] : memref<48x140xf32, #tpu.memory_space<vmem>>, vector<48x140xf32>
    %c0_3 = arith.constant 0 : index
    %c0_4 = arith.constant 0 : index
    %2 = vector.load %arg1[%c0_3, %c0_4] : memref<140x96xf32, #tpu.memory_space<vmem>>, vector<140x96xf32>
    %cst = arith.constant dense<0.000000e+00> : vector<48x96xf32>
    %3 = tpu.matmul %1, %2, %cst {dimension_numbers = #tpu.dot_dimension_numbers<[1], [0], [0], [1], [0, 0, 1, 1], [], []>} : vector<48x140xf32>, vector<140x96xf32>, vector<48x96xf32> -> vector<48x96xf32>
    %4 = vector.extract_strided_slice %0 {offsets = [0, 0], sizes = [1, 96], strides = [1, 1]} : vector<8x128xf32> to vector<1x96xf32>
    %5 = vector.broadcast %4 : vector<1x96xf32> to vector<48x96xf32>
    %6 = arith.addf %3, %5 : vector<48x96xf32>
    %c0_5 = arith.constant 0 : index
    %c0_6 = arith.constant 0 : index
    %7 = vector.load %arg2[%c0_5, %c0_6] : memref<96x96xbf16, #tpu.memory_space<vmem>>, vector<96x96xbf16>
    %cst_7 = arith.constant dense<0.000000e+00> : vector<48x96xf32>
    %8 = tpu.matmul %6, %7, %cst_7 {dimension_numbers = #tpu.dot_dimension_numbers<[1], [0], [0], [1], [0, 0, 1, 1], [], []>} : vector<48x96xf32>, vector<96x96xbf16>, vector<48x96xf32> -> vector<48x96xf32>
    %9 = vector.extract_strided_slice %8 {offsets = [0, 0], sizes = [48, 48], strides = [1, 1]} : vector<48x96xf32> to vector<48x48xf32>
    %10 = vector.extract_strided_slice %8 {offsets = [0, 48], sizes = [48, 48], strides = [1, 1]} : vector<48x96xf32> to vector<48x48xf32>
    %11 = arith.maximumf %9, %10 : vector<48x48xf32>
    %c0_8 = arith.constant 0 : index
    %c0_9 = arith.constant 0 : index
    %12 = vector.load %arg3[%c0_8, %c0_9] : memref<48x48xbf16, #tpu.memory_space<vmem>>, vector<48x48xbf16>
    %cst_10 = arith.constant dense<0.000000e+00> : vector<48x48xf32>
    %13 = tpu.matmul %12, %11, %cst_10 {dimension_numbers = #tpu.dot_dimension_numbers<[1], [0], [0], [1], [0, 0, 1, 1], [], []>} : vector<48x48xbf16>, vector<48x48xf32>, vector<48x48xf32> -> vector<48x48xf32>
    %14 = vector.extract_strided_slice %13 {offsets = [0, 0], sizes = [24, 48], strides = [1, 1]} : vector<48x48xf32> to vector<24x48xf32>
    %15 = vector.extract_strided_slice %13 {offsets = [24, 0], sizes = [24, 48], strides = [1, 1]} : vector<48x48xf32> to vector<24x48xf32>
    %16 = arith.maximumf %14, %15 : vector<24x48xf32>
    %cst_11 = arith.constant 0.000000e+00 : f32
    %17 = vector.broadcast %cst_11 : f32 to vector<24x48xf32>
    %18 = arith.maximumf %16, %17 : vector<24x48xf32>
    %19 = tpu.concatenate %18, %18, %18, %18, %18 in 0 : vector<24x48xf32>, vector<24x48xf32>, vector<24x48xf32>, vector<24x48xf32>, vector<24x48xf32> -> vector<120x48xf32>
    %c0_12 = arith.constant 0 : index
    %c0_13 = arith.constant 0 : index
    %20 = vector.load %arg4[%c0_12, %c0_13] : memref<120x48xf32, #tpu.memory_space<vmem>>, vector<120x48xf32>
    %21 = arith.mulf %19, %20 : vector<120x48xf32>
    %22 = vector.extract_strided_slice %0 {offsets = [1, 0], sizes = [1, 48], strides = [1, 1]} : vector<8x128xf32> to vector<1x48xf32>
    %23 = vector.broadcast %22 : vector<1x48xf32> to vector<120x48xf32>
    %24 = arith.addf %21, %23 : vector<120x48xf32>
    %c119_i32 = arith.constant 119 : i32
    %25 = tpu.dynamic_rotate %24 by %c119_i32 dim 0 : vector<120x48xf32>, i32 -> vector<120x48xf32>
    %c118_i32 = arith.constant 118 : i32
    %26 = tpu.dynamic_rotate %24 by %c118_i32 dim 0 : vector<120x48xf32>, i32 -> vector<120x48xf32>
    %c117_i32 = arith.constant 117 : i32
    %27 = tpu.dynamic_rotate %24 by %c117_i32 dim 0 : vector<120x48xf32>, i32 -> vector<120x48xf32>
    %c116_i32 = arith.constant 116 : i32
    %28 = tpu.dynamic_rotate %24 by %c116_i32 dim 0 : vector<120x48xf32>, i32 -> vector<120x48xf32>
    %29 = tpu.concatenate %24, %25, %26, %27, %28 in 1 : vector<120x48xf32>, vector<120x48xf32>, vector<120x48xf32>, vector<120x48xf32>, vector<120x48xf32> -> vector<120x240xf32>
    %c0_14 = arith.constant 0 : index
    %c0_15 = arith.constant 0 : index
    %30 = vector.load %arg5[%c0_14, %c0_15] : memref<240x64xf32, #tpu.memory_space<vmem>>, vector<240x64xf32>
    %cst_16 = arith.constant dense<0.000000e+00> : vector<120x64xf32>
    %31 = tpu.matmul %29, %30, %cst_16 {dimension_numbers = #tpu.dot_dimension_numbers<[1], [0], [0], [1], [0, 0, 1, 1], [], []>} : vector<120x240xf32>, vector<240x64xf32>, vector<120x64xf32> -> vector<120x64xf32>
    %32 = vector.extract_strided_slice %0 {offsets = [2, 0], sizes = [1, 64], strides = [1, 1]} : vector<8x128xf32> to vector<1x64xf32>
    %33 = vector.broadcast %32 : vector<1x64xf32> to vector<120x64xf32>
    %34 = arith.addf %31, %33 : vector<120x64xf32>
    %c0_17 = arith.constant 0 : index
    %c0_18 = arith.constant 0 : index
    %35 = vector.load %arg6[%c0_17, %c0_18] : memref<64x64xbf16, #tpu.memory_space<vmem>>, vector<64x64xbf16>
    %cst_19 = arith.constant dense<0.000000e+00> : vector<120x64xf32>
    %36 = tpu.matmul %34, %35, %cst_19 {dimension_numbers = #tpu.dot_dimension_numbers<[1], [0], [0], [1], [0, 0, 1, 1], [], []>} : vector<120x64xf32>, vector<64x64xbf16>, vector<120x64xf32> -> vector<120x64xf32>
    %37 = vector.extract_strided_slice %36 {offsets = [0, 0], sizes = [120, 32], strides = [1, 1]} : vector<120x64xf32> to vector<120x32xf32>
    %38 = vector.extract_strided_slice %36 {offsets = [0, 32], sizes = [120, 32], strides = [1, 1]} : vector<120x64xf32> to vector<120x32xf32>
    %39 = arith.maximumf %37, %38 : vector<120x32xf32>
    %c0_20 = arith.constant 0 : index
    %c0_21 = arith.constant 0 : index
    %40 = vector.load %arg7[%c0_20, %c0_21] : memref<80x120xbf16, #tpu.memory_space<vmem>>, vector<80x120xbf16>
    %cst_22 = arith.constant dense<0.000000e+00> : vector<80x32xf32>
    %41 = tpu.matmul %40, %39, %cst_22 {dimension_numbers = #tpu.dot_dimension_numbers<[1], [0], [0], [1], [0, 0, 1, 1], [], []>} : vector<80x120xbf16>, vector<120x32xf32>, vector<80x32xf32> -> vector<80x32xf32>
    %42 = vector.extract_strided_slice %41 {offsets = [0, 0], sizes = [40, 32], strides = [1, 1]} : vector<80x32xf32> to vector<40x32xf32>
    %43 = vector.extract_strided_slice %41 {offsets = [40, 0], sizes = [40, 32], strides = [1, 1]} : vector<80x32xf32> to vector<40x32xf32>
    %44 = arith.maximumf %42, %43 : vector<40x32xf32>
    %cst_23 = arith.constant 0.000000e+00 : f32
    %45 = vector.broadcast %cst_23 : f32 to vector<40x32xf32>
    %46 = arith.maximumf %44, %45 : vector<40x32xf32>
    %47 = vector.extract_strided_slice %0 {offsets = [3, 0], sizes = [1, 32], strides = [1, 1]} : vector<8x128xf32> to vector<1x32xf32>
    %48 = vector.broadcast %47 : vector<1x32xf32> to vector<40x32xf32>
    %49 = arith.mulf %46, %48 : vector<40x32xf32>
    %50 = vector.extract_strided_slice %0 {offsets = [4, 0], sizes = [1, 32], strides = [1, 1]} : vector<8x128xf32> to vector<1x32xf32>
    %51 = vector.broadcast %50 : vector<1x32xf32> to vector<40x32xf32>
    %52 = arith.addf %49, %51 : vector<40x32xf32>
    %c39_i32 = arith.constant 39 : i32
    %53 = tpu.dynamic_rotate %52 by %c39_i32 dim 0 : vector<40x32xf32>, i32 -> vector<40x32xf32>
    %c38_i32 = arith.constant 38 : i32
    %54 = tpu.dynamic_rotate %52 by %c38_i32 dim 0 : vector<40x32xf32>, i32 -> vector<40x32xf32>
    %c37_i32 = arith.constant 37 : i32
    %55 = tpu.dynamic_rotate %52 by %c37_i32 dim 0 : vector<40x32xf32>, i32 -> vector<40x32xf32>
    %56 = tpu.concatenate %52, %53, %54, %55 in 1 : vector<40x32xf32>, vector<40x32xf32>, vector<40x32xf32>, vector<40x32xf32> -> vector<40x128xf32>
    %c0_24 = arith.constant 0 : index
    %c0_25 = arith.constant 0 : index
    %57 = vector.load %arg8[%c0_24, %c0_25] : memref<2x40xf32, #tpu.memory_space<vmem>>, vector<2x40xf32>
    %cst_26 = arith.constant dense<0.000000e+00> : vector<2x128xf32>
    %58 = tpu.matmul %57, %56, %cst_26 {dimension_numbers = #tpu.dot_dimension_numbers<[1], [0], [0], [1], [0, 0, 1, 1], [], []>} : vector<2x40xf32>, vector<40x128xf32>, vector<2x128xf32> -> vector<2x128xf32>
    %c0_27 = arith.constant 0 : index
    %c0_28 = arith.constant 0 : index
    %59 = vector.load %arg9[%c0_27, %c0_28] : memref<128x16xf32, #tpu.memory_space<vmem>>, vector<128x16xf32>
    %cst_29 = arith.constant dense<0.000000e+00> : vector<2x16xf32>
    %60 = tpu.matmul %58, %59, %cst_29 {dimension_numbers = #tpu.dot_dimension_numbers<[1], [0], [0], [1], [0, 0, 1, 1], [], []>} : vector<2x128xf32>, vector<128x16xf32>, vector<2x16xf32> -> vector<2x16xf32>
    %61 = vector.extract_strided_slice %0 {offsets = [5, 0], sizes = [1, 16], strides = [1, 1]} : vector<8x128xf32> to vector<1x16xf32>
    %62 = vector.broadcast %61 : vector<1x16xf32> to vector<2x16xf32>
    %63 = arith.addf %60, %62 : vector<2x16xf32>
    %c0_30 = arith.constant 0 : index
    %c0_31 = arith.constant 0 : index
    %64 = vector.load %arg10[%c0_30, %c0_31] : memref<16x8xf32, #tpu.memory_space<vmem>>, vector<16x8xf32>
    %cst_32 = arith.constant dense<0.000000e+00> : vector<2x8xf32>
    %65 = tpu.matmul %63, %64, %cst_32 {dimension_numbers = #tpu.dot_dimension_numbers<[1], [0], [0], [1], [0, 0, 1, 1], [], []>} : vector<2x16xf32>, vector<16x8xf32>, vector<2x8xf32> -> vector<2x8xf32>
    %66 = vector.extract_strided_slice %0 {offsets = [6, 0], sizes = [1, 8], strides = [1, 1]} : vector<8x128xf32> to vector<1x8xf32>
    %67 = vector.broadcast %66 : vector<1x8xf32> to vector<2x8xf32>
    %68 = arith.addf %65, %67 : vector<2x8xf32>
    %c0_33 = arith.constant 0 : index
    %c0_34 = arith.constant 0 : index
    %69 = vector.load %arg11[%c0_33, %c0_34] : memref<8x10xf32, #tpu.memory_space<vmem>>, vector<8x10xf32>
    %cst_35 = arith.constant dense<0.000000e+00> : vector<2x10xf32>
    %70 = tpu.matmul %68, %69, %cst_35 {dimension_numbers = #tpu.dot_dimension_numbers<[1], [0], [0], [1], [0, 0, 1, 1], [], []>} : vector<2x8xf32>, vector<8x10xf32>, vector<2x10xf32> -> vector<2x10xf32>
    %71 = vector.extract_strided_slice %0 {offsets = [7, 0], sizes = [1, 10], strides = [1, 1]} : vector<8x128xf32> to vector<1x10xf32>
    %72 = vector.broadcast %71 : vector<1x10xf32> to vector<2x10xf32>
    %73 = arith.addf %70, %72 : vector<2x10xf32>
    %c0_36 = arith.constant 0 : index
    %c0_37 = arith.constant 0 : index
    %74 = vector.load %arg13[%c0_36, %c0_37] : memref<2x10xf32, #tpu.memory_space<vmem>>, vector<2x10xf32>
    tpu.vector_store %arg13[%c0_36, %c0_37], %73 {strides = array<i32>} : memref<2x10xf32, #tpu.memory_space<vmem>>, vector<2x10xf32>,
    return
  }
}

</mosaic_0001>

<bundles_post_ra>
// kernel: lenet_forward.3
= control target key start
LH: loop header
LB: loop body
LE: loop exit
PB: predicated region body
PF: predicated region fallthrough
CT: control target
= control target key end

     0   :  { %v2744_v3 = vmov 0.0|0.0   ;;  %vm81_vm0 = vcmask 97280   ;;  %s3996_s0 = inlined_call_operand.vmem [shape: f32[48,140], index: 0, kind: input, shape index: {}]   ;;  %s3997_s1 = inlined_call_operand.vmem [shape: f32[140,96], index: 1, kind: input, shape index: {}]   ;;  %s3998_s2 = inlined_call_operand.vmem [shape: bf16[96,96], index: 2, kind: input, shape index: {}]   ;;  %s3999_s3 = inlined_call_operand.vmem [shape: bf16[48,48], index: 3, kind: input, shape index: {}]   ;;  %s4000_s4 = inlined_call_operand.vmem [shape: f32[120,48], index: 4, kind: input, shape index: {}]   ;;  %s4001_s5 = inlined_call_operand.vmem [shape: f32[240,64], index: 5, kind: input, shape index: {}]   ;;  %s4002_s6 = inlined_call_operand.vmem [shape: bf16[64,64], index: 6, kind: input, shape index: {}]   ;;  %s4003_s7 = inlined_call_operand.vmem [shape: bf16[80,120], index: 7, kind: input, shape index: {}]   ;;  %s4004_s8 = inlined_call_operand.vmem [shape: f32[2,40], index: 8, kind: input, shape index: {}]   ;;  %s4005_s9 = inlined_call_operand.vmem [shape: f32[128,16], index: 9, kind: input, shape index: {}]   ;;  %s4006_s10 = inlined_call_operand.vmem [shape: f32[16,8], index: 10, kind: input, shape index: {}]   ;;  %s4007_s11 = inlined_call_operand.vmem [shape: f32[8,10], index: 11, kind: input, shape index: {}]   ;;  %s4008_s12 = inlined_call_operand.vmem [shape: f32[8,128], index: 12, kind: input, shape index: {}]   ;;  %s4009_s13 = inlined_call_operand.hbm [shape: f32[2,10], index: 13, kind: output, shape index: {}]  }
   0x1   :  { %v59_v0 = vld [vmem:[%s3997_s1] sm:$0xff]  ;;  %v60_v1 = vld [vmem:[%s3997_s1 + $0x8] sm:$0xff]  ;;  %v61_v2 = vld [vmem:[%s3997_s1 + $0x10] sm:$0xff]  ;;  %2439 = vmatprep.subr.bf16.mxu0 %v2744_v3 }
   0x2   :  { %v2440_v4 = vpack.c.bf16 %v60_v1, %v59_v0  ;;  %v62_v5 = vld [vmem:[%s3997_s1 + $0x18] sm:$0xff]  ;;  %v63_v7 = vld [vmem:[%s3997_s1 + $0x20] sm:$0xff]  ;;  %v64_v8 = vld [vmem:[%s3997_s1 + $0x28] sm:$0xff] }
   0x3   :  { %v2443_v6 = vpack.c.bf16 %v62_v5, %v61_v2  ;;  %v48_v9 = vld [vmem:[%s3996_s0 + $0x8] sm:$0xff]  ;;  %v2446_v10 = vpack.c.bf16 %v64_v8, %v63_v7  ;;  %v65_v11 = vld [vmem:[%s3997_s1 + $0x30] sm:$0xff]  ;;  %v66_v12 = vld [vmem:[%s3997_s1 + $0x38] sm:$0xff] }
   0x4   :  { %2441 = vmatpush1.bf16.msra.mxu0 %v2440_v4  ;;  %2072 = vmatprep.mubr.msk.f32.mxu0 %vm81_vm0, %v48_v9  ;;  %v67_v13 = vld [vmem:[%s3997_s1 + $0x40] sm:$0xff]  ;;  %v68_v14 = vld [vmem:[%s3997_s1 + $0x48] sm:$0xff]  ;;  %v2449_v15 = vpack.c.bf16 %v66_v12, %v65_v11  ;;  %v69_v18 = vld [vmem:[%s3997_s1 + $0x50] sm:$0xff] }
   0x5   :  { %2442 = vmatprep.subr.bf16.mxu0 %v2744_v3  ;;  %v2701_v16 = vld [vmem:[%s3998_s2] sm:$0xff]   ;;  %v2702_v17 = vld [vmem:[%s3998_s2 + $0x8] sm:$0xff]   ;;  %v2452_v19 = vpack.c.bf16 %v68_v14, %v67_v13  ;;  %v70_v20 = vld [vmem:[%s3997_s1 + $0x58] sm:$0xff] }
   0x6   :  { %2231 = vmatprep.subr.bf16.mxu1 %v2701_v16  ;;  %v2703_v21 = vld [vmem:[%s3998_s2 + $0x10] sm:$0xff]   ;;  %v2704_v22 = vld [vmem:[%s3998_s2 + $0x18] sm:$0xff]   ;;  %v71_v23 = vld [vmem:[%s3997_s1 + $0x60] sm:$0xff]  ;;  %v2455_v25 = vpack.c.bf16 %v70_v20, %v69_v18 }
   0x7   :  { %2232 = vmatpush3.bf16.msra.mxu1 %v2701_v16  ;;  %v72_v24 = vld [vmem:[%s3997_s1 + $0x68] sm:$0xff]  ;;  %v2705_v26 = vld [vmem:[%s3998_s2 + $0x20] sm:$0xff]   ;;  %v73_v27 = vld [vmem:[%s3997_s1 + $0x70] sm:$0xff] }
   0x8   :  { %2444 = vmatpush1.bf16.msra.mxu0 %v2443_v6  ;;  %2233 = vmatprep.subr.bf16.mxu1 %v2702_v17  ;;  %v2458_v28 = vpack.c.bf16 %v72_v24, %v71_v23  ;;  %v74_v29 = vld [vmem:[%s3997_s1 + $0x78] sm:$0xff] }
   0x9   :  { %2445 = vmatprep.subr.bf16.mxu0 %v2744_v3 }
   0xb   :  { %2234 = vmatpush3.bf16.msra.mxu1 %v2702_v17 }
   0xc   :  { %2447 = vmatpush1.bf16.msra.mxu0 %v2446_v10  ;;  %2235 = vmatprep.subr.bf16.mxu1 %v2703_v21 }
   0xd   :  { %2448 = vmatprep.subr.bf16.mxu0 %v2744_v3 }
   0xf   :  { %2236 = vmatpush3.bf16.msra.mxu1 %v2703_v21 }
  0x10   :  { %2450 = vmatpush1.bf16.msra.mxu0 %v2449_v15  ;;  %2237 = vmatprep.subr.bf16.mxu1 %v2704_v22 }
  0x11   :  { %2451 = vmatprep.subr.bf16.mxu0 %v2744_v3 }
  0x14   :  { %2453 = vmatpush1.bf16.msra.mxu0 %v2452_v19 }
  0x15   :  { %2454 = vmatprep.subr.bf16.mxu0 %v2744_v3 }
  0x18   :  { %2456 = vmatpush1.bf16.msra.mxu0 %v2455_v25 }
  0x19   :  { %2457 = vmatprep.subr.bf16.mxu0 %v2744_v3 }
  0x1a   :  { %18 = vsyncpa [#allocation3], 0  ;;  %2238 = vmatpush3.bf16.msra.mxu1 %v2704_v22  ;;  %v2461_v30 = vpack.c.bf16 %v74_v29, %v73_v27  ;;  %v75_v31 = vld [vmem:[%s3997_s1 + $0x80] sm:$0xff]  ;;  %v76_v32 = vld [vmem:[%s3997_s1 + $0x88] sm:$0xf]  ;;  %vm100_vm1 = vcmask 1043456   ;;  %v77_v46 = vlaneseq }
  0x1b   :  { %2239 = vmatprep.subr.bf16.mxu1 %v2705_v26  ;;  %v2464_v33 = vpack.c.bf16 %v76_v32, %v75_v31  ;;  %vm2745_vm2 = vmmov 1   ;;  %v47_v34 = vld [vmem:[%s3996_s0] sm:$0xff]  ;;  %v50_v35 = vld [vmem:[%s3996_s0 + $0x18] sm:$0xff]  ;;  %v49_v36 = vld [vmem:[%s3996_s0 + $0x10] sm:$0xff]  ;;  %vm247_vm4 = vcmask 785408   ;;  %vm2747_vm5 = vmmov 0  }
  0x1c   :  { %2459 = vmatpush1.bf16.msra.mxu0 %v2458_v28  ;;  %vm2465_vm3 = vmpackc.low %vm100_vm1, %vm2745_vm2  ;;  %v52_v37 = vld [vmem:[%s3996_s0 + $0x28] sm:$0xff]  ;;  %v51_v38 = vld [vmem:[%s3996_s0 + $0x20] sm:$0xff]  ;;  %v2950_v47 = vshrl.u32 %v77_v46, 7  ;;  %v2748_v12 = vmov 0.0   ;;  %vm380_vm6 = vcmask 392192   ;;  %s2749_s24 = smov 16  }
  0x1d   :  { %2460 = vmatprep.subr.bf16.mxu0 %v2744_v3  ;;  %v54_v39 = vld [vmem:[%s3996_s0 + $0x38] sm:$0xff]  ;;  %v53_v40 = vld [vmem:[%s3996_s0 + $0x30] sm:$0xff]  ;;  %v56_v41 = vld [vmem:[%s3996_s0 + $0x48] sm:$0xff]  ;;  %s2750_s25 = smov 96   ;;  %s2751_s27 = smov 64   ;;  %vm930_vm11 = vcmask 130048  }
  0x1e   :  { %2240 = vmatpush3.bf16.msra.mxu1 %v2705_v26  ;;  %v55_v42 = vld [vmem:[%s3996_s0 + $0x40] sm:$0xff]  ;;  %v58_v43 = vld [vmem:[%s3996_s0 + $0x58] sm:$0xff]  ;;  %v57_v44 = vld [vmem:[%s3996_s0 + $0x50] sm:$0xff]  ;;  %v79_v48 = vsub.s32 0, %v2950_v47  ;;  %s2746_s0 = smov 80   ;;  %vm613_vm7 = vcmp.lt.s32.totalorder %v2950_v47, 5 }
  0x1f   :  { %v2706_v45 = vld [vmem:[%s3998_s2 + $0x28] sm:$0xff]   ;;  %v2956_v49 = vld [vmem:[%s4008_s12] sm:$0xff]  ;;  %v968_v46 = vld [vmem:[%s4001_s5 + $0x30] sm:$0xff]  ;;  %vm582_vm8 = vcmp.lt.s32.totalorder %v2950_v47, 6  ;;  %vm644_vm9 = vcmp.lt.s32.totalorder %v2950_v47, 4  ;;  %vm551_vm10 = vcmp.lt.s32.totalorder %v2950_v47, 7 }
  0x20   :  { %2462 = vmatpush1.bf16.msra.mxu0 %v2461_v30  ;;  %2241 = vmatprep.subr.bf16.mxu1 %v2706_v45  ;;  %v80_v50 = vrot.slane %v2956_v49, %v79_v48  ;;  %v969_v48 = vld [vmem:[%s4001_s5 + $0x38] sm:$0xff]  ;;  %s2752_s1 = smov 48   ;;  %vm946_vm12 = vcmask 523264   ;;  %vm996_vm13 = vcmask 916480   ;;  %vm1477_vm14 = vcmask 982016  }
  0x21   :  { %2463 = vmatprep.subr.bf16.mxu0 %v2744_v3  ;;  %vm1716_vm15 = vcmask 261120   ;;  %vm1981_vm1 = vcmask 64512   ;;  %vm2055_vm2 = vcmask 74752  }
  0x22   :  { %2242 = vmatpush3.bf16.msra.mxu1 %v2706_v45 }
  0x23   :  { %2467 = vmatprep.subr.bf16.mxu1 %v2744_v3 }
  0x24   :  { %2466 = vmatpush1.bf16.msk.msra.mxu0 %vm2465_vm3, %v2464_v33 }
  0x25   :  { %2476 = vmatprep.subr.bf16.mxu0 %v2744_v3 }
  0x27   :  { %169 = vmatmul.mubr.f32.vlgmr.msra.gmra.mrb[0].mxu0 %v47_v34  ;;  %v2707_v34 = vld [vmem:[%s3999_s3] sm:$0xff]  }
  0x28   :  { %2073 = vmatprep.mubr.msk.f32.mxu0 %vm81_vm0, %v50_v35  ;;  %v2708_v35 = vld [vmem:[%s3999_s3 + $0x8] sm:$0xff]  }
  0x2b   :  { %174 = vmatmul.mubr.f32.gmra.mrb[2].mxu0 %v49_v36  ;;  %v2709_v36 = vld [vmem:[%s3999_s3 + $0x10] sm:$0xff]  }
  0x2c   :  { %2074 = vmatprep.mubr.msk.f32.mxu0 %vm81_vm0, %v52_v37  ;;  %v962_v37 = vld [vmem:[%s4001_s5] sm:$0xff] }
  0x2f   :  { %179 = vmatmul.mubr.f32.gmra.mrb[4].mxu0 %v51_v38  ;;  %v963_v38 = vld [vmem:[%s4001_s5 + $0x8] sm:$0xff] }
  0x30   :  { %2075 = vmatprep.mubr.msk.f32.mxu0 %vm81_vm0, %v54_v39  ;;  %v2477_v39 = vpack.c.bf16 %v963_v38, %v962_v37 }
  0x32   :  { %2478 = vmatpush1.bf16.msra.mxu0 %v2477_v39 }
  0x33   :  { %184 = vmatmul.mubr.f32.gmra.mrb[6].mxu0 %v53_v40  ;;  %2479 = vmatprep.subr.bf16.mxu0 %v2744_v3  ;;  %v964_v40 = vld [vmem:[%s4001_s5 + $0x10] sm:$0xff] }
  0x34   :  { %2076 = vmatprep.mubr.msk.f32.mxu0 %vm81_vm0, %v56_v41  ;;  %v965_v41 = vld [vmem:[%s4001_s5 + $0x18] sm:$0xff] }
  0x37   :  { %189 = vmatmul.mubr.f32.gmra.mrb[8].mxu0 %v55_v42  ;;  %v2480_v42 = vpack.c.bf16 %v965_v41, %v964_v40 }
  0x38   :  { %2077 = vmatprep.mubr.msk.f32.mxu0 %vm81_vm0, %v58_v43  ;;  %v966_v43 = vld [vmem:[%s4001_s5 + $0x20] sm:$0xff]  ;;  %vm1733_vm0 = vcmask 326656  }
  0x39   :  { %2481 = vmatpush1.bf16.msra.mxu0 %v2480_v42 }
  0x3a   :  { %2482 = vmatprep.subr.bf16.mxu0 %v2744_v3 }
  0x3b   :  { %194 = vmatmul.mubr.f32.gmra.mrb[10].mxu0 %v57_v44  ;;  %v967_v44 = vld [vmem:[%s4001_s5 + $0x28] sm:$0xff] }
  0x3c   :  { %v2483_v45 = vpack.c.bf16 %v967_v44, %v966_v43 }
  0x3e   :  { %2484 = vmatpush1.bf16.msra.mxu0 %v2483_v45 }
  0x3f   :  { %2485 = vmatprep.subr.bf16.mxu0 %v2744_v3 }
  0xfa   :  { %v170_v51 = vpop.f32.mrb[0].mxu0 }
  0xfb   :  { %v171_v52 = vadd.f32 %v170_v51, %v80_v50  ;;  %v172_v53 = vpop.f32.mrb[1].mxu0 }
  0xfc   :  { %v970_v53 = vld [vmem:[%s4001_s5 + $0x40] sm:$0xff] }
  0xfd   :  { %2243 = vmatprep.mubr.msk.f32.mxu1 %vm247_vm4, %v171_v52 }
  0xfe   :  { %v175_v54 = vpop.f32.mrb[2].mxu0 }
  0xff   :  { %v176_v55 = vadd.f32 %v175_v54, %v80_v50  ;;  %v177_v56 = vpop.f32.mrb[3].mxu0  ;;  %v971_v54 = vld [vmem:[%s4001_s5 + $0x48] sm:$0xff] }
 0x100   :  { %v2489_v56 = vpack.c.bf16 %v971_v54, %v970_v53 }
 0x101   :  { %2244 = vmatmul.mubr.msk.f32.vlgmr.msra.gmra.mrb[0].mxu1 %vm247_vm4, %v176_v55 }
 0x102   :  { %v180_v57 = vpop.f32.mrb[4].mxu0 }
 0x103   :  { %v181_v58 = vadd.f32 %v180_v57, %v80_v50  ;;  %v182_v59 = vpop.f32.mrb[5].mxu0 }
 0x104   :  { %v973_v59 = vld [vmem:[%s4001_s5 + $0x58] sm:$0xff] }
 0x105   :  { %2246 = vmatprep.mubr.msk.f32.mxu1 %vm247_vm4, %v181_v58  ;;  %v972_v58 = vld [vmem:[%s4001_s5 + $0x50] sm:$0xff] }
 0x106   :  { %v185_v60 = vpop.f32.mrb[6].mxu0 }
 0x107   :  { %v186_v61 = vadd.f32 %v185_v60, %v80_v50  ;;  %v187_v62 = vpop.f32.mrb[7].mxu0  ;;  %v974_v60 = vld [vmem:[%s4001_s5 + $0x60] sm:$0xff] }
 0x108   :  { %v975_v62 = vld [vmem:[%s4001_s5 + $0x68] sm:$0xff] }
 0x109   :  { %2247 = vmatmul.mubr.msk.f32.gmra.mrb[2].mxu1 %vm247_vm4, %v186_v61  ;;  %v2492_v61 = vpack.c.bf16 %v973_v59, %v972_v58 }
 0x10a   :  { %v190_v63 = vpop.f32.mrb[8].mxu0 }
 0x10b   :  { %v191_v0 = vadd.f32 %v190_v63, %v80_v50  ;;  %v192_v1 = vpop.f32.mrb[9].mxu0 }
 0x10d   :  { %2249 = vmatprep.mubr.msk.f32.mxu1 %vm247_vm4, %v191_v0  ;;  %v2495_v0 = vpack.c.bf16 %v975_v62, %v974_v60 }
 0x10e   :  { %v195_v2 = vpop.f32.mrb[10].mxu0 }
 0x10f   :  { %v196_v4 = vadd.f32 %v195_v2, %v80_v50  ;;  %v197_v5 = vpop.f32.mrb[11].mxu0  ;;  %v2486_v50 = vpack.c.bf16 %v969_v48, %v968_v46  ;;  %v495_v48 = vld [vmem:[%s4000_s4 + $0x50] sm:$0xff] }
 0x111   :  { %2250 = vmatmul.mubr.msk.f32.gmra.mrb[4].mxu1 %vm247_vm4, %v196_v4  ;;  %2487 = vmatpush1.bf16.msra.mxu0 %v2486_v50 }
 0x112   :  { %2264 = vmatprep.mubr.msk.bf16.mxu1 %vm2747_vm5, %v2748_v12  ;;  %2488 = vmatprep.subr.bf16.mxu0 %v2744_v3 }
 0x115   :  { %2490 = vmatpush1.bf16.msra.mxu0 %v2489_v56 }
 0x116   :  { %2491 = vmatprep.subr.bf16.mxu0 %v2744_v3 }
 0x119   :  { %2493 = vmatpush1.bf16.msra.mxu0 %v2492_v61 }
 0x11a   :  { %2494 = vmatprep.subr.bf16.mxu0 %v2744_v3 }
 0x11d   :  { %2496 = vmatpush1.bf16.msra.mxu0 %v2495_v0 }
 0x11e   :  { %2497 = vmatprep.subr.bf16.mxu0 %v2744_v3 }
 0x1d4   :  { %v2245_v6 = vpop.f32.mrb[0].mxu1 }
 0x1d5   :  { %v300_v7 = vpop.f32.mrb[1].mxu1 }
 0x1d6   :  { %v2586_v8 = vpack.i.bf16 %v2245_v6, %v300_v7 }
 0x1d8   :  { %2587 = vrot.lane.b32.xlu0 %v2586_v8, %s2746_s0  ;;  %v485_v8 = vld [vmem:[%s4000_s4] sm:$0xff] }
 0x1dc   :  { %v2248_v9 = vpop.f32.mrb[2].mxu1 }
 0x1dd   :  { %v310_v10 = vpop.f32.mrb[3].mxu1 }
 0x1de   :  { %v2591_v11 = vpack.i.bf16 %v2248_v9, %v310_v10 }
 0x1e0   :  { %2592 = vrot.lane.b32.xlu0 %v2591_v11, %s2746_s0  ;;  %v977_v11 = vld [vmem:[%s4001_s5 + $0x78] sm:$0xff] }
 0x1e4   :  { %v2251_v13 = vpop.f32.mrb[4].mxu1 }
 0x1e5   :  { %v320_v14 = vpop.f32.mrb[5].mxu1 }
 0x1e6   :  { %v2596_v15 = vpack.i.bf16 %v2251_v13, %v320_v14 }
 0x1e8   :  { %2597 = vrot.lane.b32.xlu1 %v2596_v15, %s2746_s0  ;;  %v488_v15 = vld [vmem:[%s4000_s4 + $0x18] sm:$0xff] }
 0x24a   :  { %v2588_v16 = vpop.permute.xlu0 %2587 }
 0x24b   :  { %v2590_v17 = vunpack.i.h.bf16 %v2588_v16  ;;  %v2589_v18 = vunpack.i.l.bf16 %v2588_v16 }
 0x24d   :  { %v354_v19 = vmax.f32 %v2245_v6, %v2590_v17  ;;  %v353_v20 = vmax.f32 %v300_v7, %v2589_v18  ;;  %v517_v6 = vsub.s32 1, %v2950_v47 }
 0x24f   :  { %v2468_v21 = vpack.c.bf16 %v354_v19, %v353_v20  ;;  %v486_v20 = vld [vmem:[%s4000_s4 + $0x8] sm:$0xff] }
 0x251   :  { %2469 = vmatpush3.bf16.msra.mxu1 %v2468_v21  ;;  %v489_v21 = vld [vmem:[%s4000_s4 + $0x20] sm:$0xff] }
 0x252   :  { %v2593_v22 = vpop.permute.xlu0 %2592  ;;  %2470 = vmatprep.subr.bf16.mxu1 %v2744_v3 }
 0x253   :  { %v2595_v23 = vunpack.i.h.bf16 %v2593_v22  ;;  %v2594_v24 = vunpack.i.l.bf16 %v2593_v22 }
 0x255   :  { %v356_v25 = vmax.f32 %v2248_v9, %v2595_v23  ;;  %v355_v26 = vmax.f32 %v310_v10, %v2594_v24  ;;  %v976_v10 = vld [vmem:[%s4001_s5 + $0x70] sm:$0xff]  ;;  %v492_v24 = vld [vmem:[%s4000_s4 + $0x38] sm:$0xff] }
 0x256   :  { %v2498_v19 = vpack.c.bf16 %v977_v11, %v976_v10 }
 0x257   :  { %v2471_v27 = vpack.c.bf16 %v356_v25, %v355_v26 }
 0x258   :  { %2499 = vmatpush1.bf16.msra.mxu0 %v2498_v19 }
 0x259   :  { %2472 = vmatpush3.bf16.msra.mxu1 %v2471_v27  ;;  %2500 = vmatprep.subr.bf16.mxu0 %v2744_v3  ;;  %v491_v27 = vld [vmem:[%s4000_s4 + $0x30] sm:$0xff] }
 0x25a   :  { %v2598_v28 = vpop.permute.xlu1 %2597  ;;  %2473 = vmatprep.subr.bf16.mxu1 %v2744_v3 }
 0x25b   :  { %v2600_v29 = vunpack.i.h.bf16 %v2598_v28  ;;  %v2599_v30 = vunpack.i.l.bf16 %v2598_v28 }
 0x25d   :  { %v358_v31 = vmax.f32 %v2251_v13, %v2600_v29  ;;  %v357_v32 = vmax.f32 %v320_v14, %v2599_v30  ;;  %v3050_v14 = vrot.slane %v2956_v49, %v517_v6 }
 0x25f   :  { %v2474_v33 = vpack.c.bf16 %v358_v31, %v357_v32  ;;  %v496_v31 = vld [vmem:[%s4000_s4 + $0x58] sm:$0xff]  ;;  %v499_v32 = vld [vmem:[%s4000_s4 + $0x70] sm:$0xff] }
 0x261   :  { %2475 = vmatpush3.bf16.msra.mxu1 %v2474_v33 }
 0x262   :  { %2276 = vmatprep.subr.bf16.mxu1 %v2748_v12 }
 0x264   :  { %2265 = vmatmul.mubr.msk.bf16.vlgmr.msra.gmra.mrb[8].mxu1 %vm380_vm6, %v2707_v34 }
 0x265   :  { %2268 = vmatprep.mubr.msk.bf16.mxu1 %vm2747_vm5, %v2748_v12 }
 0x26c   :  { %2269 = vmatmul.mubr.msk.bf16.gmra.mrb[12].mxu1 %vm380_vm6, %v2708_v35 }
 0x26d   :  { %2272 = vmatprep.mubr.msk.bf16.mxu1 %vm2747_vm5, %v2748_v12 }
 0x274   :  { %2273 = vmatmul.mubr.msk.bf16.gmra.mrb[16].mxu1 %vm380_vm6, %v2709_v36 }
 0x275   :  { %2284 = vmatprep.mubr.msk.f32.mxu1 %vm2747_vm5, %v2748_v12 }
 0x337   :  { %v456_v51 = vpop.f32.mrb[8].mxu1 }
 0x338   :  { %v2266_v52 = vpop.f32.mrb[9].mxu1 }
 0x339   :  { %v459_v55 = vpop.f32.mrb[10].mxu1 }
 0x33a   :  { %v2267_v57 = vpop.f32.mrb[11].mxu1 }
 0x33b   :  { %v494_v57 = vld [vmem:[%s4000_s4 + $0x48] sm:$0xff] }
 0x33f   :  { %v464_v63 = vpop.f32.mrb[12].mxu1 }
 0x340   :  { %v2270_v1 = vpop.f32.mrb[13].mxu1 }
 0x341   :  { %v467_v2 = vpop.f32.mrb[14].mxu1 }
 0x342   :  { %v479_v4 = vmax.f32 %v456_v51, %v467_v2  ;;  %v2271_v5 = vpop.f32.mrb[15].mxu1 }
 0x343   :  { %v487_v5 = vld [vmem:[%s4000_s4 + $0x10] sm:$0xff] }
 0x344   :  { %v3038_v7 = vmax.f32 %v479_v4, 0.0  ;;  %v498_v4 = vld [vmem:[%s4000_s4 + $0x68] sm:$0xff] }
 0x346   :  { %v500_v16 = vmul.f32 %v485_v8, %v3038_v7  ;;  %v503_v25 = vmul.f32 %v488_v15, %v3038_v7  ;;  %v506_v36 = vmul.f32 %v491_v27, %v3038_v7 }
 0x347   :  { %v472_v9 = vpop.f32.mrb[16].mxu1 }
 0x348   :  { %v2274_v13 = vpop.f32.mrb[17].mxu1  ;;  %v480_v17 = vmax.f32 %v459_v55, %v472_v9  ;;  %v3075_v28 = vadd.f32 %v3050_v14, %v500_v16  ;;  %v3096_v37 = vadd.f32 %v3050_v14, %v503_v25  ;;  %v3134_v54 = vadd.f32 %v3050_v14, %v506_v36  ;;  %v497_v16 = vld [vmem:[%s4000_s4 + $0x60] sm:$0xff] }
 0x349   :  { %v475_v18 = vpop.f32.mrb[18].mxu1 }
 0x34a   :  { %v481_v22 = vmax.f32 %v464_v63, %v475_v18  ;;  %v2275_v49 = vpop.f32.mrb[19].mxu1  ;;  %v3062_v23 = vmax.f32 %v480_v17, 0.0  ;;  %v598_v40 = vrot.slane %v3075_v28, 3  ;;  %v567_v42 = vrot.slane %v3075_v28, 2 }
 0x34b   :  { %v629_v55 = vrot.slane %v3075_v28, 4  ;;  %v601_v56 = vrot.slane %v3096_v37, 3  ;;  %v509_v63 = vmul.f32 %v494_v57, %v3038_v7  ;;  %v570_v0 = vrot.slane %v3096_v37, 2 }
 0x34c   :  { %v3068_v26 = vmax.f32 %v481_v22, 0.0  ;;  %v501_v29 = vmul.f32 %v486_v20, %v3062_v23  ;;  %v504_v30 = vmul.f32 %v489_v21, %v3062_v23  ;;  %v507_v33 = vmul.f32 %v492_v24, %v3062_v23 }
 0x34d   :  { %v510_v58 = vmul.f32 %v495_v48, %v3062_v23  ;;  %v604_v1 = vrot.slane %v3134_v54, 3  ;;  %v3187_v11 = vadd.f32 %v3050_v14, %v509_v63  ;;  %v632_v13 = vrot.slane %v3096_v37, 4  ;;  %v978_v63 = vld [vmem:[%s4001_s5 + $0x80] sm:$0xff] }
 0x34e   :  { %v3087_v34 = vadd.f32 %v3050_v14, %v501_v29  ;;  %v3090_v35 = vadd.f32 %v3050_v14, %v504_v30  ;;  %v511_v38 = vmul.f32 %v496_v31, %v3068_v26  ;;  %v514_v39 = vmul.f32 %v499_v32, %v3068_v26 }
 0x34f   :  { %v3105_v44 = vadd.f32 %v3050_v14, %v507_v33  ;;  %v3162_v2 = vadd.f32 %v3050_v14, %v510_v58  ;;  %v635_v15 = vrot.slane %v3134_v54, 4  ;;  %v513_v17 = vmul.f32 %v498_v4, %v3062_v23  ;;  %v979_v4 = vld [vmem:[%s4001_s5 + $0x88] sm:$0xff] }
 0x350   :  { %v599_v41 = vrot.slane %v3087_v34, 3  ;;  %v568_v43 = vrot.slane %v3087_v34, 2  ;;  %v3108_v45 = vadd.f32 %v3050_v14, %v511_v38  ;;  %v3111_v46 = vadd.f32 %v3050_v14, %v514_v39 }
 0x351   :  { %v630_v52 = vrot.slane %v3087_v34, 4  ;;  %v602_v53 = vrot.slane %v3090_v35, 3  ;;  %v571_v61 = vrot.slane %v3090_v35, 2  ;;  %v605_v62 = vrot.slane %v3105_v44, 3 }
 0x352   :  { %v627_v50 = vsel %vm613_vm7, %v598_v40, %v599_v41  ;;  %v596_v51 = vsel %vm582_vm8, %v567_v42, %v568_v43  ;;  %v633_v9 = vrot.slane %v3090_v35, 4  ;;  %v636_v10 = vrot.slane %v3105_v44, 4 }
 0x353   :  { %795 = vrot.lane.b32.xlu0 %v627_v50, %s2749_s24  ;;  %735 = vrot.lane.b32.xlu1 %v596_v51, %s2750_s25  ;;  %v658_v59 = vsel %vm644_vm9, %v629_v55, %v630_v52  ;;  %v624_v60 = vsel %vm613_vm7, %v601_v56, %v602_v53  ;;  %v593_v6 = vsel %vm582_vm8, %v570_v0, %v571_v61  ;;  %v574_v21 = vrot.slane %v3105_v44, 2 }
 0x354   :  { %v621_v8 = vsel %vm613_vm7, %v604_v1, %v605_v62  ;;  %v502_v18 = vmul.f32 %v487_v5, %v3068_v26  ;;  %v655_v19 = vsel %vm644_vm9, %v632_v13, %v633_v9  ;;  %v652_v20 = vsel %vm644_vm9, %v635_v15, %v636_v10  ;;  %v490_v5 = vld [vmem:[%s4000_s4 + $0x28] sm:$0xff] }
 0x355   :  { %v577_v22 = vrot.slane %v3162_v2, 2  ;;  %v512_v49 = vmul.f32 %v497_v16, %v3038_v7  ;;  %v573_v23 = vrot.slane %v3134_v54, 2  ;;  %v576_v24 = vrot.slane %v3187_v11, 2 }
 0x356   :  { %v3216_v25 = vadd.f32 %v3050_v14, %v513_v17  ;;  %v3219_v27 = vadd.f32 %v3050_v14, %v502_v18  ;;  %v608_v30 = vrot.slane %v3162_v2, 3  ;;  %v639_v31 = vrot.slane %v3162_v2, 4 }
 0x357   :  { %855 = vrot.lane.b32.xlu0 %v658_v59, %s2751_s27  ;;  %801 = vrot.lane.b32.xlu1 %v624_v60, %s2749_s24  ;;  %v590_v29 = vsel %vm582_vm8, %v573_v23, %v574_v21  ;;  %v587_v7 = vsel %vm582_vm8, %v576_v24, %v577_v22  ;;  %v3238_v32 = vadd.f32 %v3050_v14, %v512_v49  ;;  %v607_v33 = vrot.slane %v3187_v11, 3  ;;  %v980_v49 = vld [vmem:[%s4001_s5 + $0x90] sm:$0xff] }
 0x358   :  { %v638_v36 = vrot.slane %v3187_v11, 4  ;;  %v611_v38 = vrot.slane %v3216_v25, 3  ;;  %v580_v50 = vrot.slane %v3216_v25, 2  ;;  %v536_v51 = vrot.slane %v3219_v27, 1 }
 0x359   :  { %v618_v39 = vsel %vm613_vm7, %v607_v33, %v608_v30  ;;  %v610_v57 = vrot.slane %v3238_v32, 3  ;;  %v579_v58 = vrot.slane %v3238_v32, 2  ;;  %v535_v59 = vrot.slane %v3087_v34, 1 }
 0x35a   :  { %v649_v48 = vsel %vm644_vm9, %v638_v36, %v639_v31  ;;  %v600_v60 = vrot.slane %v3219_v27, 3  ;;  %v534_v16 = vrot.slane %v3075_v28, 1  ;;  %v643_v18 = vrot.slane %v3111_v46, 4 }
 0x35b   :  { %741 = vrot.lane.b32.xlu0 %v593_v6, %s2750_s25  ;;  %807 = vrot.lane.b32.xlu1 %v621_v8, %s2749_s24  ;;  %v615_v6 = vsel %vm613_vm7, %v610_v57, %v611_v38  ;;  %v584_v8 = vsel %vm582_vm8, %v579_v58, %v580_v50  ;;  %v564_v17 = vsel %vm551_vm10, %v535_v59, %v536_v51 }
 0x35f   :  { %861 = vrot.lane.b32.xlu0 %v655_v19, %s2751_s27  ;;  %867 = vrot.lane.b32.xlu1 %v652_v20, %s2751_s27  ;;  %v565_v19 = vsel %vm551_vm10, %v534_v16, %v535_v59  ;;  %v2501_v20 = vpack.c.bf16 %v979_v4, %v978_v63  ;;  %v3313_v59 = vsel %vm644_vm9, %v643_v18, %v629_v55  ;;  %v983_v4 = vld [vmem:[%s4001_s5 + $0xa8] sm:$0xff]  ;;  %v538_v55 = vrot.slane %v3090_v35, 1 }
 0x361   :  { %2502 = vmatpush1.bf16.msra.mxu0 %v2501_v20 }
 0x362   :  { %2503 = vmatprep.subr.bf16.mxu0 %v2744_v3 }
 0x363   :  { %747 = vrot.lane.b32.xlu0 %v590_v29, %s2750_s25  ;;  %753 = vrot.lane.b32.xlu1 %v587_v7, %s2750_s25  ;;  %v981_v29 = vld [vmem:[%s4001_s5 + $0x98] sm:$0xff]  ;;  %v505_v7 = vmul.f32 %v490_v5, %v3068_v26  ;;  %v537_v5 = vrot.slane %v3096_v37, 1 }
 0x364   :  { %v2504_v63 = vpack.c.bf16 %v981_v29, %v980_v49 }
 0x365   :  { %v563_v29 = vsel %vm551_vm10, %v536_v51, %v537_v5 }
 0x366   :  { %2505 = vmatpush1.bf16.msra.mxu0 %v2504_v63 }
 0x367   :  { %813 = vrot.lane.b32.xlu0 %v618_v39, %s2749_s24  ;;  %873 = vrot.lane.b32.xlu1 %v649_v48, %s2751_s27  ;;  %v2601_v39 = vpack.i.bf16 %v564_v17, %v565_v19  ;;  %v626_v48 = vsel %vm613_vm7, %v599_v41, %v600_v60  ;;  %v982_v41 = vld [vmem:[%s4001_s5 + $0xa0] sm:$0xff]  ;;  %v631_v17 = vrot.slane %v3219_v27, 4 }
 0x368   :  { %v493_v19 = vld [vmem:[%s4000_s4 + $0x40] sm:$0xff]  ;;  %2506 = vmatprep.subr.bf16.mxu0 %v2744_v3 }
 0x369   :  { %v508_v51 = vmul.f32 %v493_v19, %v3068_v26  ;;  %v987_v26 = vld [vmem:[%s4001_s5 + $0xc8] sm:$0xff] }
 0x36b   :  { %819 = vrot.lane.b32.xlu0 %v615_v6, %s2749_s24  ;;  %759 = vrot.lane.b32.xlu1 %v584_v8, %s2750_s25  ;;  %v569_v6 = vrot.slane %v3219_v27, 2  ;;  %v3327_v8 = vadd.f32 %v3050_v14, %v505_v7  ;;  %v2507_v7 = vpack.c.bf16 %v983_v4, %v982_v41  ;;  %v986_v4 = vld [vmem:[%s4001_s5 + $0xc0] sm:$0xff] }
 0x36d   :  { %v594_v20 = vsel %vm582_vm8, %v569_v6, %v570_v0  ;;  %v595_v49 = vsel %vm582_vm8, %v568_v43, %v569_v6  ;;  %v985_v0 = vld [vmem:[%s4001_s5 + $0xb8] sm:$0xff]  ;;  %v562_v43 = vsel %vm551_vm10, %v537_v5, %v538_v55  ;;  %v657_v6 = vsel %vm644_vm9, %v630_v52, %v631_v17  ;;  %2508 = vmatpush1.bf16.msra.mxu0 %v2507_v7 }
 0x36e   :  { %v603_v63 = vrot.slane %v3327_v8, 3  ;;  %2509 = vmatprep.subr.bf16.mxu0 %v2744_v3  ;;  %v3370_v52 = vadd.f32 %v3050_v14, %v508_v51  ;;  %v625_v5 = vsel %vm613_vm7, %v600_v60, %v601_v56  ;;  %v988_v14 = vld [vmem:[%s4001_s5 + $0xd0] sm:$0xff]  ;;  %v989_v56 = vld [vmem:[%s4001_s5 + $0xd8] sm:$0xff]  ;;  %v572_v60 = vrot.slane %v3327_v8, 2 }
 0x36f   :  { %797 = vrot.lane.b32.xlu0 %v626_v48, %s2749_s24  ;;  %2602 = vrot.lane.b32.xlu1 %v2601_v39, %s2752_s1  ;;  %v984_v39 = vld [vmem:[%s4001_s5 + $0xb0] sm:$0xff]  ;;  %v2606_v48 = vpack.i.bf16 %v562_v43, %v563_v29  ;;  %v539_v7 = vrot.slane %v3327_v8, 1  ;;  %v541_v43 = vrot.slane %v3105_v44, 1 }
 0x370   :  { %v2510_v41 = vpack.c.bf16 %v985_v0, %v984_v39  ;;  %v623_v19 = vsel %vm613_vm7, %v602_v53, %v603_v63  ;;  %v656_v53 = vsel %vm644_vm9, %v631_v17, %v632_v13  ;;  %v542_v39 = vrot.slane %v3370_v52, 1  ;;  %v990_v13 = vld [vmem:[%s4001_s5 + $0xe0] sm:$0xff]  ;;  %v991_v17 = vld [vmem:[%s4001_s5 + $0xe8] sm:$0xff] }
 0x371   :  { %v2516_v0 = vpack.c.bf16 %v989_v56, %v988_v14  ;;  %v592_v51 = vsel %vm582_vm8, %v571_v61, %v572_v60  ;;  %v606_v56 = vrot.slane %v3370_v52, 3 }
 0x372   :  { %2511 = vmatpush1.bf16.msra.mxu0 %v2510_v41  ;;  %v561_v41 = vsel %vm551_vm10, %v538_v55, %v539_v7  ;;  %v591_v55 = vsel %vm582_vm8, %v572_v60, %v573_v23  ;;  %v578_v60 = vrot.slane %v3108_v45, 2 }
 0x373   :  { %739 = vrot.lane.b32.xlu0 %v594_v20, %s2750_s25  ;;  %737 = vrot.lane.b32.xlu1 %v595_v49, %s2750_s25  ;;  %v634_v20 = vrot.slane %v3327_v8, 4  ;;  %v2513_v49 = vpack.c.bf16 %v987_v26, %v986_v4  ;;  %v558_v4 = vsel %vm551_vm10, %v541_v43, %v542_v39  ;;  %v2519_v26 = vpack.c.bf16 %v991_v17, %v990_v13 }
 0x374   :  { %2512 = vmatprep.subr.bf16.mxu0 %v2744_v3 }
 0x375   :  { %v654_v29 = vsel %vm644_vm9, %v633_v9, %v634_v20  ;;  %v540_v9 = vrot.slane %v3134_v54, 1  ;;  %v653_v14 = vsel %vm644_vm9, %v634_v20, %v635_v15  ;;  %v619_v15 = vsel %vm613_vm7, %v606_v56, %v607_v33 }
 0x376   :  { %2514 = vmatpush1.bf16.msra.mxu0 %v2513_v49  ;;  %v637_v49 = vrot.slane %v3370_v52, 4  ;;  %v544_v20 = vrot.slane %v3162_v2, 1 }
 0x377   :  { %857 = vrot.lane.b32.xlu1 %v657_v6, %s2751_s27  ;;  %2607 = vrot.lane.b32.xlu0 %v2606_v48, %s2752_s1  ;;  %v622_v48 = vsel %vm613_vm7, %v603_v63, %v604_v1  ;;  %v560_v6 = vsel %vm551_vm10, %v539_v7, %v540_v9  ;;  %v559_v61 = vsel %vm551_vm10, %v540_v9, %v541_v43 }
 0x378   :  { %2515 = vmatprep.subr.bf16.mxu0 %v2744_v3  ;;  %v2611_v1 = vpack.i.bf16 %v560_v6, %v561_v41  ;;  %v2616_v63 = vpack.i.bf16 %v558_v4, %v559_v61  ;;  %v651_v23 = vsel %vm644_vm9, %v636_v10, %v637_v49  ;;  %v543_v10 = vrot.slane %v3187_v11, 1 }
 0x379   :  { %v548_v6 = vrot.slane %v3111_v46, 1  ;;  %v547_v41 = vrot.slane %v3216_v25, 1 }
 0x37a   :  { %2517 = vmatpush1.bf16.msra.mxu0 %v2516_v0  ;;  %v557_v33 = vsel %vm551_vm10, %v542_v39, %v543_v10  ;;  %v556_v7 = vsel %vm551_vm10, %v543_v10, %v544_v20  ;;  %v609_v39 = vrot.slane %v3108_v45, 3 }
 0x37b   :  { %799 = vrot.lane.b32.xlu1 %v625_v5, %s2749_s24  ;;  %803 = vrot.lane.b32.xlu0 %v623_v19, %s2749_s24  ;;  %v575_v5 = vrot.slane %v3370_v52, 2  ;;  %v2621_v0 = vpack.i.bf16 %v556_v7, %v557_v33 }
 0x37c   :  { %2518 = vmatprep.subr.bf16.mxu0 %v2744_v3  ;;  %v617_v43 = vsel %vm613_vm7, %v608_v30, %v609_v39  ;;  %v641_v30 = vrot.slane %v3238_v32, 4 }
 0x37d   :  { %v589_v19 = vsel %vm582_vm8, %v574_v21, %v575_v5  ;;  %v620_v21 = vsel %vm613_vm7, %v605_v62, %v606_v56  ;;  %v650_v62 = vsel %vm644_vm9, %v637_v49, %v638_v36  ;;  %v586_v36 = vsel %vm582_vm8, %v577_v22, %v578_v60  ;;  %v2710_v49 = vld [vmem:[%s4002_s6] sm:$0xff]  }
 0x37e   :  { %2520 = vmatpush1.bf16.msra.mxu0 %v2519_v26  ;;  %v640_v22 = vrot.slane %v3108_v45, 4  ;;  %v642_v26 = vrot.slane %v3216_v25, 4  ;;  %2277 = vmatpush3.bf16.msra.mxu1 %v2710_v49 }
 0x37f   :  { %859 = vrot.lane.b32.xlu1 %v656_v53, %s2751_s27  ;;  %863 = vrot.lane.b32.xlu0 %v654_v29, %s2751_s27  ;;  %v588_v53 = vsel %vm582_vm8, %v575_v5, %v576_v24  ;;  %v545_v29 = vrot.slane %v3108_v45, 1  ;;  %v546_v24 = vrot.slane %v3238_v32, 1  ;;  %v612_v5 = vrot.slane %v3111_v46, 3 }
 0x380   :  { %2542 = vmatprep.subr.bf16.mxu0 %v2744_v3  ;;  %v647_v4 = vsel %vm644_vm9, %v640_v22, %v641_v30  ;;  %2278 = vmatprep.subr.bf16.mxu1 %v2748_v12 }
 0x381   :  { %v554_v13 = vsel %vm551_vm10, %v545_v29, %v546_v24  ;;  %v555_v17 = vsel %vm551_vm10, %v544_v20, %v545_v29  ;;  %v553_v61 = vsel %vm551_vm10, %v546_v24, %v547_v41 }
 0x382   :  { %v2626_v9 = vpack.i.bf16 %v554_v13, %v555_v17 }
 0x383   :  { %743 = vrot.lane.b32.xlu1 %v592_v51, %s2750_s25  ;;  %805 = vrot.lane.b32.xlu0 %v622_v48, %s2749_s24  ;;  %v648_v51 = vsel %vm644_vm9, %v639_v31, %v640_v22  ;;  %v585_v48 = vsel %vm582_vm8, %v578_v60, %v579_v58  ;;  %v616_v31 = vsel %vm613_vm7, %v609_v39, %v610_v57  ;;  %v581_v57 = vrot.slane %v3111_v46, 2 }
 0x384   :  { %v552_v58 = vsel %vm551_vm10, %v547_v41, %v548_v6 }
 0x387   :  { %2612 = vrot.lane.b32.xlu1 %v2611_v1, %s2752_s1  ;;  %2617 = vrot.lane.b32.xlu0 %v2616_v63, %s2752_s1  ;;  %v2631_v1 = vpack.i.bf16 %v552_v58, %v553_v61  ;;  %v646_v63 = vsel %vm644_vm9, %v641_v30, %v642_v26 }
 0x38b   :  { %745 = vrot.lane.b32.xlu1 %v591_v55, %s2750_s25  ;;  %749 = vrot.lane.b32.xlu0 %v589_v19, %s2750_s25  ;;  %v583_v55 = vsel %vm582_vm8, %v580_v50, %v581_v57  ;;  %v614_v19 = vsel %vm613_vm7, %v611_v38, %v612_v5  ;;  %v597_v50 = vsel %vm582_vm8, %v581_v57, %v567_v42  ;;  %v2711_v38 = vld [vmem:[%s4002_s6 + $0x8] sm:$0xff]  }
 0x38c   :  { %v566_v42 = vsel %vm551_vm10, %v548_v6, %v534_v16  ;;  %2279 = vmatpush3.bf16.msra.mxu1 %v2711_v38 }
 0x38d   :  { %2280 = vmatprep.subr.bf16.mxu1 %v2748_v12 }
 0x38f   :  { %865 = vrot.lane.b32.xlu1 %v653_v14, %s2751_s27  ;;  %869 = vrot.lane.b32.xlu0 %v651_v23, %s2751_s27  ;;  %v645_v14 = vsel %vm644_vm9, %v642_v26, %v643_v18  ;;  %v628_v18 = vsel %vm613_vm7, %v612_v5, %v598_v40  ;;  %v2712_v23 = vld [vmem:[%s4002_s6 + $0x10] sm:$0xff]  }
 0x390   :  { %2281 = vmatpush3.bf16.msra.mxu1 %v2712_v23 }
 0x391   :  { %2282 = vmatprep.subr.bf16.mxu1 %v2748_v12 }
 0x393   :  { %809 = vrot.lane.b32.xlu1 %v620_v21, %s2749_s24  ;;  %811 = vrot.lane.b32.xlu0 %v619_v15, %s2749_s24 }
 0x397   :  { %751 = vrot.lane.b32.xlu1 %v588_v53, %s2750_s25  ;;  %871 = vrot.lane.b32.xlu0 %v650_v62, %s2751_s27 }
 0x39b   :  { %2622 = vrot.lane.b32.xlu1 %v2621_v0, %s2752_s1  ;;  %755 = vrot.lane.b32.xlu0 %v586_v36, %s2750_s25 }
 0x39f   :  { %815 = vrot.lane.b32.xlu1 %v617_v43, %s2749_s24  ;;  %2627 = vrot.lane.b32.xlu0 %v2626_v9, %s2752_s1 }
 0x3a3   :  { %875 = vrot.lane.b32.xlu1 %v648_v51, %s2751_s27  ;;  %757 = vrot.lane.b32.xlu0 %v585_v48, %s2750_s25 }
 0x3a7   :  { %817 = vrot.lane.b32.xlu1 %v616_v31, %s2749_s24  ;;  %877 = vrot.lane.b32.xlu0 %v647_v4, %s2751_s27 }
 0x3ab   :  { %2632 = vrot.lane.b32.xlu1 %v2631_v1, %s2752_s1  ;;  %879 = vrot.lane.b32.xlu0 %v646_v63, %s2751_s27 }
 0x3af   :  { %761 = vrot.lane.b32.xlu1 %v583_v55, %s2750_s25  ;;  %821 = vrot.lane.b32.xlu0 %v614_v19, %s2749_s24 }
 0x3b3   :  { %881 = vrot.lane.b32.xlu1 %v645_v14, %s2751_s27  ;;  %763 = vrot.lane.b32.xlu0 %v597_v50, %s2750_s25 }
 0x3b7   :  { %823 = vrot.lane.b32.xlu1 %v628_v18, %s2749_s24  ;;  %703 = vrot.lane.b32.xlu0 %v566_v42, %s2752_s1 }
 0x3bb   :  { %883 = vrot.lane.b32.xlu1 %v3313_v59, %s2751_s27 }
 0x3c5   :  { %v796_v40 = vpop.permute.xlu0 %795  ;;  %v736_v56 = vpop.permute.xlu1 %735 }
 0x3c6   :  { %v931_v16 = vsel %vm930_vm11, %v736_v56, %v796_v40 }
 0x3c9   :  { %v856_v21 = vpop.permute.xlu0 %855  ;;  %v802_v15 = vpop.permute.xlu1 %801 }
 0x3ca   :  { %v947_v10 = vsel %vm946_vm12, %v931_v16, %v856_v21 }
 0x3cb   :  { %2096 = vmatprep.mubr.msk.f32.mxu0 %vm996_vm13, %v947_v10 }
 0x3cd   :  { %v742_v20 = vpop.permute.xlu0 %741  ;;  %v808_v53 = vpop.permute.xlu1 %807 }
 0x3ce   :  { %v934_v55 = vsel %vm930_vm11, %v742_v20, %v802_v15 }
 0x3d1   :  { %v862_v62 = vpop.permute.xlu0 %861  ;;  %v3583_v33 = vpop.permute.xlu1 %867 }
 0x3d2   :  { %v950_v49 = vsel %vm946_vm12, %v934_v55, %v862_v62 }
 0x3d5   :  { %v3585_v59 = vpop.permute.xlu0 %747  ;;  %v3587_v60 = vpop.permute.xlu1 %753 }
 0x3d9   :  { %v3589_v29 = vpop.permute.xlu0 %813  ;;  %v3591_v7 = vpop.permute.xlu1 %873 }
 0x3dd   :  { %v3593_v24 = vpop.permute.xlu0 %819  ;;  %v3595_v0 = vpop.permute.xlu1 %759 }
 0x3e1   :  { %v798_v36 = vpop.permute.xlu0 %797  ;;  %v2603_v39 = vpop.permute.xlu1 %2602 }
 0x3e2   :  { %v2604_v13 = vunpack.i.l.bf16 %v2603_v39  ;;  %v2605_v17 = vunpack.i.h.bf16 %v2603_v39 }
 0x3e4   :  { %v900_v9 = vsel %vm380_vm6, %v3075_v28, %v2604_v13  ;;  %v901_v48 = vsel %vm380_vm6, %v3087_v34, %v2605_v17 }
 0x3e5   :  { %v740_v43 = vpop.permute.xlu0 %739  ;;  %v738_v22 = vpop.permute.xlu1 %737  ;;  %v915_v51 = vsel %vm247_vm4, %v900_v9, %v736_v56 }
 0x3e6   :  { %1107 = vmatmul.mubr.f32.vlgmr.msra.gmra.mrb[12].mxu0 %v915_v51  ;;  %v932_v6 = vsel %vm930_vm11, %v738_v22, %v798_v36  ;;  %v916_v4 = vsel %vm247_vm4, %v901_v48, %v738_v22  ;;  %v937_v36 = vsel %vm930_vm11, %v3585_v59, %v808_v53 }
 0x3e7   :  { %v953_v22 = vsel %vm946_vm12, %v937_v36, %v3583_v33 }
 0x3e9   :  { %v858_v30 = vpop.permute.xlu1 %857  ;;  %v2608_v41 = vpop.permute.xlu0 %2607 }
 0x3ea   :  { %v948_v31 = vsel %vm946_vm12, %v932_v6, %v858_v30  ;;  %v2609_v58 = vunpack.i.l.bf16 %v2608_v41  ;;  %v2610_v61 = vunpack.i.h.bf16 %v2608_v41 }
 0x3eb   :  { %2097 = vmatprep.mubr.msk.f32.mxu0 %vm996_vm13, %v948_v31 }
 0x3ec   :  { %1112 = vmatmul.mubr.f32.gmra.mrb[14].mxu0 %v916_v4  ;;  %v902_v1 = vsel %vm380_vm6, %v3219_v27, %v2609_v58  ;;  %v903_v14 = vsel %vm380_vm6, %v3096_v37, %v2610_v61 }
 0x3ed   :  { %v800_v28 = vpop.permute.xlu1 %799  ;;  %v804_v26 = vpop.permute.xlu0 %803  ;;  %v917_v19 = vsel %vm247_vm4, %v902_v1, %v740_v43  ;;  %v918_v18 = vsel %vm247_vm4, %v903_v14, %v742_v20 }
 0x3ee   :  { %v933_v34 = vsel %vm930_vm11, %v740_v43, %v800_v28 }
 0x3f1   :  { %v860_v63 = vpop.permute.xlu1 %859  ;;  %v864_v57 = vpop.permute.xlu0 %863 }
 0x3f2   :  { %v949_v5 = vsel %vm946_vm12, %v933_v34, %v860_v63 }
 0x3f3   :  { %2098 = vmatprep.mubr.msk.f32.mxu0 %vm996_vm13, %v949_v5 }
 0x3f4   :  { %1117 = vmatmul.mubr.f32.gmra.mrb[16].mxu0 %v917_v19 }
 0x3f5   :  { %v744_v50 = vpop.permute.xlu1 %743  ;;  %v806_v27 = vpop.permute.xlu0 %805  ;;  %2099 = vmatprep.mubr.msk.f32.mxu0 %vm996_vm13, %v950_v49 }
 0x3f6   :  { %v935_v38 = vsel %vm930_vm11, %v744_v50, %v804_v26 }
 0x3f7   :  { %v951_v42 = vsel %vm946_vm12, %v935_v38, %v864_v57 }
 0x3f8   :  { %1122 = vmatmul.mubr.f32.gmra.mrb[18].mxu0 %v918_v18 }
 0x3f9   :  { %v2613_v23 = vpop.permute.xlu1 %2612  ;;  %v2618_v40 = vpop.permute.xlu0 %2617  ;;  %2100 = vmatprep.mubr.msk.f32.mxu0 %vm996_vm13, %v951_v42 }
 0x3fa   :  { %v2614_v56 = vunpack.i.l.bf16 %v2613_v23  ;;  %v2615_v16 = vunpack.i.h.bf16 %v2613_v23  ;;  %v2619_v62 = vunpack.i.l.bf16 %v2618_v40  ;;  %v2620_v43 = vunpack.i.h.bf16 %v2618_v40 }
 0x3fc   :  { %v904_v37 = vsel %vm380_vm6, %v3090_v35, %v2614_v56  ;;  %v905_v20 = vsel %vm380_vm6, %v3327_v8, %v2615_v16  ;;  %v906_v8 = vsel %vm380_vm6, %v3134_v54, %v2619_v62  ;;  %v907_v41 = vsel %vm380_vm6, %v3105_v44, %v2620_v43 }
 0x3fd   :  { %v746_v21 = vpop.permute.xlu1 %745  ;;  %v750_v15 = vpop.permute.xlu0 %749  ;;  %v919_v10 = vsel %vm247_vm4, %v904_v37, %v744_v50  ;;  %v921_v6 = vsel %vm247_vm4, %v906_v8, %v3585_v59  ;;  %v940_v44 = vsel %vm930_vm11, %v3587_v60, %v3589_v29 }
 0x3fe   :  { %1127 = vmatmul.mubr.f32.gmra.mrb[20].mxu0 %v919_v10  ;;  %v936_v39 = vsel %vm930_vm11, %v746_v21, %v806_v27  ;;  %v920_v35 = vsel %vm247_vm4, %v905_v20, %v746_v21  ;;  %v922_v58 = vsel %vm247_vm4, %v907_v41, %v750_v15  ;;  %v956_v5 = vsel %vm946_vm12, %v940_v44, %v3591_v7 }
 0x401   :  { %v866_v13 = vpop.permute.xlu1 %865  ;;  %v870_v17 = vpop.permute.xlu0 %869 }
 0x402   :  { %v952_v9 = vsel %vm946_vm12, %v936_v39, %v866_v13 }
 0x403   :  { %2101 = vmatprep.mubr.msk.f32.mxu0 %vm996_vm13, %v952_v9 }
 0x404   :  { %1132 = vmatmul.mubr.f32.gmra.mrb[22].mxu0 %v920_v35 }
 0x405   :  { %v810_v51 = vpop.permute.xlu1 %809  ;;  %v812_v53 = vpop.permute.xlu0 %811  ;;  %2102 = vmatprep.mubr.msk.f32.mxu0 %vm996_vm13, %v953_v22 }
 0x406   :  { %v938_v48 = vsel %vm930_vm11, %v750_v15, %v810_v51  ;;  %v2713_v51 = vld [vmem:[%s4002_s6 + $0x18] sm:$0xff]  }
 0x407   :  { %v954_v30 = vsel %vm946_vm12, %v938_v48, %v870_v17  ;;  %2283 = vmatpush3.bf16.msra.mxu1 %v2713_v51 }
 0x408   :  { %1137 = vmatmul.mubr.f32.gmra.mrb[24].mxu0 %v921_v6  ;;  %2521 = vmatprep.subr.bf16.mxu1 %v2744_v3 }
 0x409   :  { %v752_v31 = vpop.permute.xlu1 %751  ;;  %v872_v33 = vpop.permute.xlu0 %871  ;;  %2103 = vmatprep.mubr.msk.f32.mxu0 %vm996_vm13, %v954_v30 }
 0x40a   :  { %v939_v54 = vsel %vm930_vm11, %v752_v31, %v812_v53  ;;  %v3704_v53 = vld [vmem:[%s4008_s12] sm:$0xff] }
 0x40b   :  { %v955_v4 = vsel %vm946_vm12, %v939_v54, %v872_v33 }
 0x40c   :  { %1142 = vmatmul.mubr.f32.gmra.mrb[26].mxu0 %v922_v58 }
 0x40d   :  { %v2623_v28 = vpop.permute.xlu1 %2622  ;;  %v756_v26 = vpop.permute.xlu0 %755  ;;  %2104 = vmatprep.mubr.msk.f32.mxu0 %vm996_vm13, %v955_v4 }
 0x40e   :  { %v2625_v59 = vunpack.i.h.bf16 %v2623_v28  ;;  %v2624_v61 = vunpack.i.l.bf16 %v2623_v28 }
 0x410   :  { %v908_v1 = vsel %vm380_vm6, %v3370_v52, %v2624_v61  ;;  %v909_v19 = vsel %vm380_vm6, %v3187_v11, %v2625_v59 }
 0x411   :  { %v816_v34 = vpop.permute.xlu1 %815  ;;  %v2628_v63 = vpop.permute.xlu0 %2627  ;;  %v923_v57 = vsel %vm247_vm4, %v908_v1, %v752_v31  ;;  %v924_v52 = vsel %vm247_vm4, %v909_v19, %v3587_v60 }
 0x412   :  { %v2629_v55 = vunpack.i.l.bf16 %v2628_v63  ;;  %1147 = vmatmul.mubr.f32.gmra.mrb[28].mxu0 %v923_v57  ;;  %v941_v49 = vsel %vm930_vm11, %v756_v26, %v816_v34  ;;  %v2630_v50 = vunpack.i.h.bf16 %v2628_v63 }
 0x413   :  { %2105 = vmatprep.mubr.msk.f32.mxu0 %vm996_vm13, %v956_v5 }
 0x414   :  { %v910_v7 = vsel %vm380_vm6, %v3162_v2, %v2629_v55  ;;  %v911_v23 = vsel %vm380_vm6, %v3108_v45, %v2630_v50  ;;  %v943_v2 = vsel %vm930_vm11, %v3595_v0, %v3593_v24 }
 0x415   :  { %v876_v29 = vpop.permute.xlu1 %875  ;;  %v758_v14 = vpop.permute.xlu0 %757  ;;  %v925_v18 = vsel %vm247_vm4, %v910_v7, %v756_v26 }
 0x416   :  { %v957_v27 = vsel %vm946_vm12, %v941_v49, %v876_v29  ;;  %1152 = vmatmul.mubr.f32.gmra.mrb[30].mxu0 %v924_v52  ;;  %v926_v16 = vsel %vm247_vm4, %v911_v23, %v758_v14 }
 0x417   :  { %2106 = vmatprep.mubr.msk.f32.mxu0 %vm996_vm13, %v957_v27 }
 0x419   :  { %v818_v38 = vpop.permute.xlu1 %817  ;;  %v878_v11 = vpop.permute.xlu0 %877 }
 0x41a   :  { %v942_v42 = vsel %vm930_vm11, %v758_v14, %v818_v38  ;;  %1157 = vmatmul.mubr.f32.gmra.mrb[32].mxu0 %v925_v18 }
 0x41b   :  { %v958_v60 = vsel %vm946_vm12, %v942_v42, %v878_v11 }
 0x41c   :  { %2107 = vmatprep.mubr.msk.f32.mxu0 %vm996_vm13, %v958_v60 }
 0x41d   :  { %v2633_v40 = vpop.permute.xlu1 %2632  ;;  %v880_v56 = vpop.permute.xlu0 %879 }
 0x41e   :  { %v2634_v37 = vunpack.i.l.bf16 %v2633_v40  ;;  %v959_v21 = vsel %vm946_vm12, %v943_v2, %v880_v56  ;;  %1162 = vmatmul.mubr.f32.gmra.mrb[34].mxu0 %v926_v16  ;;  %v2635_v15 = vunpack.i.h.bf16 %v2633_v40 }
 0x41f   :  { %2108 = vmatprep.mubr.msk.f32.mxu0 %vm996_vm13, %v959_v21 }
 0x420   :  { %v912_v45 = vsel %vm380_vm6, %v3238_v32, %v2634_v37  ;;  %v913_v24 = vsel %vm380_vm6, %v3216_v25, %v2635_v15 }
 0x421   :  { %v762_v10 = vpop.permute.xlu1 %761  ;;  %v822_v62 = vpop.permute.xlu0 %821  ;;  %v927_v20 = vsel %vm247_vm4, %v912_v45, %v3595_v0 }
 0x422   :  { %1167 = vmatmul.mubr.f32.gmra.mrb[36].mxu0 %v927_v20  ;;  %v944_v36 = vsel %vm930_vm11, %v762_v10, %v822_v62  ;;  %v928_v9 = vsel %vm247_vm4, %v913_v24, %v762_v10 }
 0x425   :  { %v882_v39 = vpop.permute.xlu1 %881  ;;  %v764_v13 = vpop.permute.xlu0 %763 }
 0x426   :  { %v960_v17 = vsel %vm946_vm12, %v944_v36, %v882_v39 }
 0x427   :  { %2109 = vmatprep.mubr.msk.f32.mxu0 %vm996_vm13, %v960_v17 }
 0x428   :  { %1172 = vmatmul.mubr.f32.gmra.mrb[38].mxu0 %v928_v9 }
 0x429   :  { %v824_v32 = vpop.permute.xlu1 %823  ;;  %v704_v35 = vpop.permute.xlu0 %703 }
 0x42a   :  { %v914_v0 = vsel %vm380_vm6, %v3111_v46, %v704_v35  ;;  %v945_v43 = vsel %vm930_vm11, %v764_v13, %v824_v32  ;;  %v994_v46 = vsub.s32 2, %v2950_v47 }
 0x42b   :  { %v929_v8 = vsel %vm247_vm4, %v914_v0, %v764_v13 }
 0x42c   :  { %v3707_v48 = vrot.slane %v3704_v53, %v994_v46 }
 0x42d   :  { %v884_v22 = vpop.permute.xlu1 %883 }
 0x42e   :  { %v961_v25 = vsel %vm946_vm12, %v945_v43, %v884_v22 }
 0x42f   :  { %2110 = vmatprep.mubr.msk.f32.mxu0 %vm996_vm13, %v961_v25 }
 0x430   :  { %1177 = vmatmul.mubr.f32.gmra.mrb[40].mxu0 %v929_v8 }
 0x431   :  { %2389 = vmatprep.mubr.msk.f32.mxu0 %vm2747_vm5, %v2748_v12 }
 0x4b9   :  { %v1108_v6 = vpop.f32.mrb[12].mxu0 }
 0x4ba   :  { %v1109_v30 = vadd.f32 %v1108_v6, %v3707_v48  ;;  %v1110_v41 = vpop.f32.mrb[13].mxu0 }
 0x4bc   :  { %2285 = vmatmul.mubr.msk.f32.vlgmr.msra.gmra.mrb[6].mxu1 %vm946_vm12, %v1109_v30 }
 0x4bd   :  { %2287 = vmatprep.mubr.msk.f32.mxu1 %vm2747_vm5, %v2748_v12 }
 0x4bf   :  { %v1113_v31 = vpop.f32.mrb[14].mxu0 }
 0x4c0   :  { %v1114_v33 = vadd.f32 %v1113_v31, %v3707_v48  ;;  %v1115_v54 = vpop.f32.mrb[15].mxu0 }
 0x4c2   :  { %2288 = vmatmul.mubr.msk.f32.gmra.mrb[20].mxu1 %vm946_vm12, %v1114_v33 }
 0x4c3   :  { %2290 = vmatprep.mubr.msk.f32.mxu1 %vm2747_vm5, %v2748_v12 }
 0x4c7   :  { %v1118_v4 = vpop.f32.mrb[16].mxu0 }
 0x4c8   :  { %v1119_v58 = vadd.f32 %v1118_v4, %v3707_v48  ;;  %v1120_v28 = vpop.f32.mrb[17].mxu0 }
 0x4ca   :  { %2291 = vmatmul.mubr.msk.f32.gmra.mrb[22].mxu1 %vm946_vm12, %v1119_v58 }
 0x4cb   :  { %v1123_v26 = vpop.f32.mrb[18].mxu0  ;;  %2293 = vmatprep.mubr.msk.f32.mxu1 %vm2747_vm5, %v2748_v12 }
 0x4cc   :  { %v1124_v59 = vadd.f32 %v1123_v26, %v3707_v48  ;;  %v1125_v61 = vpop.f32.mrb[19].mxu0 }
 0x4ce   :  { %2294 = vmatmul.mubr.msk.f32.gmra.mrb[24].mxu1 %vm946_vm12, %v1124_v59 }
 0x4cf   :  { %2296 = vmatprep.mubr.msk.f32.mxu1 %vm2747_vm5, %v2748_v12 }
 0x4d1   :  { %v1128_v44 = vpop.f32.mrb[20].mxu0 }
 0x4d2   :  { %v1129_v1 = vadd.f32 %v1128_v44, %v3707_v48  ;;  %v1130_v34 = vpop.f32.mrb[21].mxu0 }
 0x4d4   :  { %2297 = vmatmul.mubr.msk.f32.gmra.mrb[26].mxu1 %vm946_vm12, %v1129_v1 }
 0x4d5   :  { %2299 = vmatprep.mubr.msk.f32.mxu1 %vm2747_vm5, %v2748_v12 }
 0x4d7   :  { %v1133_v63 = vpop.f32.mrb[22].mxu0 }
 0x4d8   :  { %v1134_v57 = vadd.f32 %v1133_v63, %v3707_v48  ;;  %v1135_v5 = vpop.f32.mrb[23].mxu0 }
 0x4da   :  { %2300 = vmatmul.mubr.msk.f32.gmra.mrb[28].mxu1 %vm946_vm12, %v1134_v57 }
 0x4db   :  { %v1138_v55 = vpop.f32.mrb[24].mxu0  ;;  %2302 = vmatprep.mubr.msk.f32.mxu1 %vm2747_vm5, %v2748_v12 }
 0x4dc   :  { %v1139_v19 = vadd.f32 %v1138_v55, %v3707_v48  ;;  %v1140_v49 = vpop.f32.mrb[25].mxu0 }
 0x4de   :  { %2303 = vmatmul.mubr.msk.f32.gmra.mrb[30].mxu1 %vm946_vm12, %v1139_v19 }
 0x4df   :  { %v1143_v29 = vpop.f32.mrb[26].mxu0  ;;  %2305 = vmatprep.mubr.msk.f32.mxu1 %vm2747_vm5, %v2748_v12 }
 0x4e0   :  { %v1144_v14 = vadd.f32 %v1143_v29, %v3707_v48  ;;  %v1145_v52 = vpop.f32.mrb[27].mxu0 }
 0x4e2   :  { %2306 = vmatmul.mubr.msk.f32.gmra.mrb[32].mxu1 %vm946_vm12, %v1144_v14 }
 0x4e3   :  { %2308 = vmatprep.mubr.msk.f32.mxu1 %vm2747_vm5, %v2748_v12 }
 0x4e5   :  { %v1148_v50 = vpop.f32.mrb[28].mxu0 }
 0x4e6   :  { %v1149_v27 = vadd.f32 %v1148_v50, %v3707_v48  ;;  %v1150_v7 = vpop.f32.mrb[29].mxu0 }
 0x4e8   :  { %2309 = vmatmul.mubr.msk.f32.gmra.mrb[34].mxu1 %vm946_vm12, %v1149_v27 }
 0x4e9   :  { %v1153_v38 = vpop.f32.mrb[30].mxu0  ;;  %2311 = vmatprep.mubr.msk.f32.mxu1 %vm2747_vm5, %v2748_v12 }
 0x4ea   :  { %v1154_v11 = vadd.f32 %v1153_v38, %v3707_v48  ;;  %v1155_v18 = vpop.f32.mrb[31].mxu0 }
 0x4ec   :  { %2312 = vmatmul.mubr.msk.f32.gmra.mrb[36].mxu1 %vm946_vm12, %v1154_v11 }
 0x4ed   :  { %v1158_v42 = vpop.f32.mrb[32].mxu0  ;;  %2314 = vmatprep.mubr.msk.f32.mxu1 %vm2747_vm5, %v2748_v12 }
 0x4ee   :  { %v1159_v23 = vadd.f32 %v1158_v42, %v3707_v48  ;;  %v1160_v60 = vpop.f32.mrb[33].mxu0 }
 0x4f0   :  { %2315 = vmatmul.mubr.msk.f32.gmra.mrb[38].mxu1 %vm946_vm12, %v1159_v23 }
 0x4f1   :  { %v1163_v2 = vpop.f32.mrb[34].mxu0  ;;  %2317 = vmatprep.mubr.msk.f32.mxu1 %vm2747_vm5, %v2748_v12 }
 0x4f2   :  { %v1164_v40 = vadd.f32 %v1163_v2, %v3707_v48  ;;  %v1165_v56 = vpop.f32.mrb[35].mxu0 }
 0x4f4   :  { %2318 = vmatmul.mubr.msk.f32.gmra.mrb[40].mxu1 %vm946_vm12, %v1164_v40 }
 0x4f5   :  { %v1168_v16 = vpop.f32.mrb[36].mxu0  ;;  %2320 = vmatprep.mubr.msk.f32.mxu1 %vm2747_vm5, %v2748_v12 }
 0x4f6   :  { %v1169_v37 = vadd.f32 %v1168_v16, %v3707_v48  ;;  %v1170_v21 = vpop.f32.mrb[37].mxu0 }
 0x4f8   :  { %2321 = vmatmul.mubr.msk.f32.gmra.mrb[42].mxu1 %vm946_vm12, %v1169_v37 }
 0x4f9   :  { %2323 = vmatprep.mubr.msk.f32.mxu1 %vm2747_vm5, %v2748_v12 }
 0x4fb   :  { %v1173_v15 = vpop.f32.mrb[38].mxu0 }
 0x4fc   :  { %v1174_v45 = vadd.f32 %v1173_v15, %v3707_v48  ;;  %v1175_v10 = vpop.f32.mrb[39].mxu0 }
 0x4fe   :  { %2324 = vmatmul.mubr.msk.f32.gmra.mrb[44].mxu1 %vm946_vm12, %v1174_v45 }
 0x4ff   :  { %2326 = vmatprep.mubr.msk.f32.mxu1 %vm2747_vm5, %v2748_v12 }
 0x503   :  { %v1178_v62 = vpop.f32.mrb[40].mxu0 }
 0x504   :  { %v1179_v20 = vadd.f32 %v1178_v62, %v3707_v48  ;;  %v1180_v24 = vpop.f32.mrb[41].mxu0 }
 0x506   :  { %2327 = vmatmul.mubr.msk.f32.gmra.mrb[46].mxu1 %vm946_vm12, %v1179_v20 }
 0x507   :  { %2359 = vmatprep.mubr.msk.bf16.mxu1 %vm2747_vm5, %v2748_v12 }
 0x58f   :  { %v1293_v36 = vpop.f32.mrb[6].mxu1 }
 0x590   :  { %v2286_v39 = vpop.f32.mrb[7].mxu1 }
 0x595   :  { %v1298_v13 = vpop.f32.mrb[20].mxu1 }
 0x596   :  { %v2636_v17 = vpack.i.bf16 %v1298_v13, %v1293_v36  ;;  %v2289_v9 = vpop.f32.mrb[21].mxu1 }
 0x598   :  { %2637 = vrot.lane.b32.xlu0 %v2636_v17, %s2750_s25 }
 0x59d   :  { %v1303_v32 = vpop.f32.mrb[22].mxu1 }
 0x59e   :  { %v2292_v35 = vpop.f32.mrb[23].mxu1 }
 0x5a1   :  { %v1308_v0 = vpop.f32.mrb[24].mxu1 }
 0x5a2   :  { %v2641_v43 = vpack.i.bf16 %v1308_v0, %v1303_v32  ;;  %v2295_v22 = vpop.f32.mrb[25].mxu1 }
 0x5a4   :  { %2642 = vrot.lane.b32.xlu1 %v2641_v43, %s2750_s25 }
 0x5a7   :  { %v1313_v25 = vpop.f32.mrb[26].mxu1 }
 0x5a8   :  { %v2298_v8 = vpop.f32.mrb[27].mxu1 }
 0x5ad   :  { %v1318_v51 = vpop.f32.mrb[28].mxu1 }
 0x5ae   :  { %v2646_v46 = vpack.i.bf16 %v1318_v51, %v1313_v25  ;;  %v2301_v48 = vpop.f32.mrb[29].mxu1 }
 0x5b0   :  { %2647 = vrot.lane.b32.xlu0 %v2646_v46, %s2750_s25 }
 0x5b1   :  { %v1323_v6 = vpop.f32.mrb[30].mxu1 }
 0x5b2   :  { %v2304_v30 = vpop.f32.mrb[31].mxu1 }
 0x5b5   :  { %v1328_v41 = vpop.f32.mrb[32].mxu1 }
 0x5b6   :  { %v2651_v31 = vpack.i.bf16 %v1328_v41, %v1323_v6  ;;  %v2307_v33 = vpop.f32.mrb[33].mxu1 }
 0x5b8   :  { %2652 = vrot.lane.b32.xlu1 %v2651_v31, %s2750_s25 }
 0x5bb   :  { %v1333_v54 = vpop.f32.mrb[34].mxu1 }
 0x5bc   :  { %v2310_v4 = vpop.f32.mrb[35].mxu1 }
 0x5bf   :  { %v1338_v58 = vpop.f32.mrb[36].mxu1 }
 0x5c0   :  { %v2656_v28 = vpack.i.bf16 %v1338_v58, %v1333_v54  ;;  %v2313_v26 = vpop.f32.mrb[37].mxu1 }
 0x5c1   :  { %v2717_v26 = vld [vmem:[%s4003_s7 + $0x18] sm:$0xff]  }
 0x5c2   :  { %2657 = vrot.lane.b32.xlu0 %v2656_v28, %s2750_s25  ;;  %v2716_v28 = vld [vmem:[%s4003_s7 + $0x10] sm:$0xff]  }
 0x5c3   :  { %v1343_v59 = vpop.f32.mrb[38].mxu1 }
 0x5c4   :  { %v2316_v61 = vpop.f32.mrb[39].mxu1 }
 0x5c7   :  { %v1348_v44 = vpop.f32.mrb[40].mxu1 }
 0x5c8   :  { %v2661_v1 = vpack.i.bf16 %v1348_v44, %v1343_v59  ;;  %v2319_v34 = vpop.f32.mrb[41].mxu1 }
 0x5ca   :  { %2662 = vrot.lane.b32.xlu1 %v2661_v1, %s2750_s25 }
 0x5cb   :  { %v1353_v63 = vpop.f32.mrb[42].mxu1 }
 0x5cc   :  { %v2322_v57 = vpop.f32.mrb[43].mxu1 }
 0x5d1   :  { %v1358_v5 = vpop.f32.mrb[44].mxu1 }
 0x5d2   :  { %v2666_v55 = vpack.i.bf16 %v1358_v5, %v1353_v63  ;;  %v2325_v19 = vpop.f32.mrb[45].mxu1 }
 0x5d4   :  { %2667 = vrot.lane.b32.xlu0 %v2666_v55, %s2750_s25 }
 0x5d9   :  { %v3776_v49 = vpop.f32.mrb[46].mxu1 }
 0x5da   :  { %1410 = vrot.lane.b32.xlu1 %v3776_v49, %s2750_s25  ;;  %v2328_v29 = vpop.f32.mrb[47].mxu1 }
 0x60a   :  { %v2638_v14 = vpop.permute.xlu0 %2637 }
 0x60b   :  { %v2640_v52 = vunpack.i.h.bf16 %v2638_v14  ;;  %v2639_v50 = vunpack.i.l.bf16 %v2638_v14 }
 0x60d   :  { %v1428_v27 = vmax.f32 %v1298_v13, %v2640_v52  ;;  %v1427_v7 = vmax.f32 %v1293_v36, %v2639_v50  ;;  %v1610_v52 = vsub.s32 3, %v2950_v47 }
 0x60f   :  { %v2522_v38 = vpack.c.bf16 %v1428_v27, %v1427_v7  ;;  %v1611_v7 = vrot.slane %v3704_v53, %v1610_v52 }
 0x611   :  { %2523 = vmatpush3.bf16.msra.mxu1 %v2522_v38  ;;  %v1619_v38 = vsub.s32 4, %v2950_v47 }
 0x612   :  { %2524 = vmatprep.subr.bf16.mxu1 %v2744_v3 }
 0x616   :  { %v2643_v11 = vpop.permute.xlu1 %2642 }
 0x617   :  { %v2645_v18 = vunpack.i.h.bf16 %v2643_v11  ;;  %v2644_v42 = vunpack.i.l.bf16 %v2643_v11 }
 0x619   :  { %v1430_v23 = vmax.f32 %v1308_v0, %v2645_v18  ;;  %v1429_v60 = vmax.f32 %v1303_v32, %v2644_v42 }
 0x61b   :  { %v2525_v2 = vpack.c.bf16 %v1430_v23, %v1429_v60 }
 0x61d   :  { %2526 = vmatpush3.bf16.msra.mxu1 %v2525_v2  ;;  %v1620_v2 = vrot.slane %v3704_v53, %v1619_v38  ;;  %v1807_v38 = vld [vmem:[%s4005_s9] sm:$0xff] }
 0x61e   :  { %2527 = vmatprep.subr.bf16.mxu1 %v2744_v3 }
 0x622   :  { %v2648_v40 = vpop.permute.xlu0 %2647 }
 0x623   :  { %v2650_v56 = vunpack.i.h.bf16 %v2648_v40  ;;  %v2649_v16 = vunpack.i.l.bf16 %v2648_v40 }
 0x625   :  { %v1432_v37 = vmax.f32 %v1318_v51, %v2650_v56  ;;  %v1431_v21 = vmax.f32 %v1313_v25, %v2649_v16 }
 0x627   :  { %v2528_v15 = vpack.c.bf16 %v1432_v37, %v1431_v21 }
 0x629   :  { %2529 = vmatpush3.bf16.msra.mxu1 %v2528_v15 }
 0x62a   :  { %v2653_v45 = vpop.permute.xlu1 %2652  ;;  %2530 = vmatprep.subr.bf16.mxu1 %v2744_v3 }
 0x62b   :  { %v2655_v10 = vunpack.i.h.bf16 %v2653_v45  ;;  %v2654_v62 = vunpack.i.l.bf16 %v2653_v45 }
 0x62d   :  { %v1434_v20 = vmax.f32 %v1328_v41, %v2655_v10  ;;  %v1433_v24 = vmax.f32 %v1323_v6, %v2654_v62 }
 0x62f   :  { %v2531_v36 = vpack.c.bf16 %v1434_v20, %v1433_v24 }
 0x631   :  { %2532 = vmatpush3.bf16.msra.mxu1 %v2531_v36 }
 0x632   :  { %2533 = vmatprep.subr.bf16.mxu1 %v2744_v3 }
 0x634   :  { %v2658_v39 = vpop.permute.xlu0 %2657 }
 0x635   :  { %v2660_v13 = vunpack.i.h.bf16 %v2658_v39  ;;  %v2659_v17 = vunpack.i.l.bf16 %v2658_v39 }
 0x637   :  { %v1436_v9 = vmax.f32 %v1338_v58, %v2660_v13  ;;  %v1435_v32 = vmax.f32 %v1333_v54, %v2659_v17  ;;  %v2714_v54 = vld [vmem:[%s4003_s7] sm:$0xff]   ;;  %v2715_v58 = vld [vmem:[%s4003_s7 + $0x8] sm:$0xff]  }
 0x639   :  { %v2534_v35 = vpack.c.bf16 %v1436_v9, %v1435_v32 }
 0x63b   :  { %2535 = vmatpush3.bf16.msra.mxu1 %v2534_v35 }
 0x63c   :  { %v2663_v0 = vpop.permute.xlu1 %2662  ;;  %2536 = vmatprep.subr.bf16.mxu1 %v2744_v3 }
 0x63d   :  { %v2665_v43 = vunpack.i.h.bf16 %v2663_v0  ;;  %v2664_v22 = vunpack.i.l.bf16 %v2663_v0 }
 0x63f   :  { %v1438_v25 = vmax.f32 %v1348_v44, %v2665_v43  ;;  %v1437_v8 = vmax.f32 %v1343_v59, %v2664_v22  ;;  %v2718_v59 = vld [vmem:[%s4003_s7 + $0x20] sm:$0xff]   ;;  %s2753_s7 = smov 32  }
 0x641   :  { %v2537_v51 = vpack.c.bf16 %v1438_v25, %v1437_v8 }
 0x643   :  { %2538 = vmatpush3.bf16.msra.mxu1 %v2537_v51 }
 0x644   :  { %2539 = vmatprep.subr.bf16.mxu1 %v2744_v3 }
 0x646   :  { %v2668_v46 = vpop.permute.xlu0 %2667 }
 0x647   :  { %v2670_v48 = vunpack.i.h.bf16 %v2668_v46  ;;  %v2669_v6 = vunpack.i.l.bf16 %v2668_v46 }
 0x649   :  { %v1440_v30 = vmax.f32 %v1358_v5, %v2670_v48  ;;  %v1439_v41 = vmax.f32 %v1353_v63, %v2669_v6 }
 0x64b   :  { %v2540_v31 = vpack.c.bf16 %v1440_v30, %v1439_v41 }
 0x64c   :  { %v1411_v33 = vpop.permute.xlu1 %1410 }
 0x64d   :  { %2541 = vmatpush3.bf16.msra.mxu1 %v2540_v31  ;;  %v1441_v4 = vmax.f32 %v3776_v49, %v1411_v33 }
 0x64e   :  { %2357 = vmatprep.subr.mxu1 %v2748_v12 }
 0x651   :  { %2358 = vmatpush3.msra.mxu1 %v1441_v4 }
 0x652   :  { %2360 = vmatmul.mubr.msk.bf16.vlgmr.msra.gmra.mrb[48].mxu1 %vm1477_vm14, %v2714_v54  ;;  %2548 = vmatprep.subr.bf16.mxu1 %v2744_v3 }
 0x653   :  { %2363 = vmatprep.mubr.msk.bf16.mxu1 %vm2747_vm5, %v2748_v12 }
 0x65a   :  { %2364 = vmatmul.mubr.msk.bf16.gmra.mrb[52].mxu1 %vm1477_vm14, %v2715_v58 }
 0x65b   :  { %2367 = vmatprep.mubr.msk.bf16.mxu1 %vm2747_vm5, %v2748_v12 }
 0x662   :  { %2368 = vmatmul.mubr.msk.bf16.gmra.mrb[56].mxu1 %vm1477_vm14, %v2716_v28 }
 0x663   :  { %2371 = vmatprep.mubr.msk.bf16.mxu1 %vm2747_vm5, %v2748_v12 }
 0x66a   :  { %2372 = vmatmul.mubr.msk.bf16.gmra.mrb[60].mxu1 %vm1477_vm14, %v2717_v26 }
 0x66b   :  { %2375 = vmatprep.mubr.msk.bf16.mxu1 %vm2747_vm5, %v2748_v12 }
 0x672   :  { %2376 = vmatmul.mubr.msk.bf16.gmra.mrb[64].mxu1 %vm1477_vm14, %v2718_v59 }
 0x673   :  { %2424 = vmatprep.mubr.msk.f32.mxu1 %vm2747_vm5, %v2748_v12 }
 0x725   :  { %v1559_v61 = vpop.f32.mrb[48].mxu1 }
 0x726   :  { %v2361_v44 = vpop.f32.mrb[49].mxu1 }
 0x727   :  { %v1562_v1 = vpop.f32.mrb[50].mxu1 }
 0x728   :  { %v2362_v34 = vpop.f32.mrb[51].mxu1 }
 0x72d   :  { %v1567_v63 = vpop.f32.mrb[52].mxu1 }
 0x72e   :  { %v2365_v57 = vpop.f32.mrb[53].mxu1 }
 0x72f   :  { %v1570_v5 = vpop.f32.mrb[54].mxu1 }
 0x730   :  { %v2366_v55 = vpop.f32.mrb[55].mxu1 }
 0x735   :  { %v1575_v19 = vpop.f32.mrb[56].mxu1 }
 0x736   :  { %v2369_v49 = vpop.f32.mrb[57].mxu1 }
 0x737   :  { %v1578_v29 = vpop.f32.mrb[58].mxu1 }
 0x738   :  { %v1598_v14 = vmax.f32 %v1559_v61, %v1578_v29  ;;  %v2370_v50 = vpop.f32.mrb[59].mxu1 }
 0x73a   :  { %v1603_v27 = vmax.f32 %v1598_v14, 0.0 }
 0x73c   :  { %v1612_v60 = vmul.f32 %v1611_v7, %v1603_v27 }
 0x73d   :  { %v1583_v11 = vpop.f32.mrb[60].mxu1 }
 0x73e   :  { %v1599_v18 = vmax.f32 %v1562_v1, %v1583_v11  ;;  %v2373_v42 = vpop.f32.mrb[61].mxu1  ;;  %v3818_v15 = vadd.f32 %v1620_v2, %v1612_v60  ;;  %v1808_v11 = vld [vmem:[%s4005_s9 + $0x8] sm:$0xff]  ;;  %v1810_v60 = vld [vmem:[%s4005_s9 + $0x18] sm:$0xff] }
 0x73f   :  { %v1586_v23 = vpop.f32.mrb[62].mxu1 }
 0x740   :  { %v1604_v40 = vmax.f32 %v1599_v18, 0.0  ;;  %v1600_v56 = vmax.f32 %v1567_v63, %v1586_v23  ;;  %v2374_v16 = vpop.f32.mrb[63].mxu1  ;;  %v1636_v35 = vrot.slane %v3818_v15, 2  ;;  %v1626_v22 = vrot.slane %v3818_v15, 1  ;;  %v1809_v18 = vld [vmem:[%s4005_s9 + $0x10] sm:$0xff] }
 0x741   :  { %v1646_v28 = vrot.slane %v3818_v15, 3  ;;  %v2549_v23 = vpack.c.bf16 %v1808_v11, %v1807_v38  ;;  %v1812_v16 = vld [vmem:[%s4005_s9 + $0x28] sm:$0xff] }
 0x742   :  { %v1613_v37 = vmul.f32 %v1611_v7, %v1604_v40  ;;  %v1605_v21 = vmax.f32 %v1600_v56, 0.0  ;;  %v2552_v40 = vpack.c.bf16 %v1810_v60, %v1809_v18  ;;  %v1811_v56 = vld [vmem:[%s4005_s9 + $0x20] sm:$0xff] }
 0x743   :  { %2550 = vmatpush3.bf16.msra.mxu1 %v2549_v23 }
 0x744   :  { %v3820_v45 = vadd.f32 %v1620_v2, %v1613_v37  ;;  %v1614_v10 = vmul.f32 %v1611_v7, %v1605_v21  ;;  %2551 = vmatprep.subr.bf16.mxu1 %v2744_v3 }
 0x745   :  { %v1591_v62 = vpop.f32.mrb[64].mxu1 }
 0x746   :  { %v3822_v20 = vadd.f32 %v1620_v2, %v1614_v10  ;;  %v1601_v24 = vmax.f32 %v1570_v5, %v1591_v62  ;;  %v2377_v36 = vpop.f32.mrb[65].mxu1  ;;  %v1637_v39 = vrot.slane %v3820_v45, 2  ;;  %v1627_v17 = vrot.slane %v3820_v45, 1  ;;  %v1813_v62 = vld [vmem:[%s4005_s9 + $0x30] sm:$0xff] }
 0x747   :  { %v1594_v13 = vpop.f32.mrb[66].mxu1  ;;  %v1647_v33 = vrot.slane %v3820_v45, 3  ;;  %2553 = vmatpush3.bf16.msra.mxu1 %v2552_v40  ;;  %v2555_v10 = vpack.c.bf16 %v1812_v16, %v1811_v56  ;;  %v1897_v16 = vld [vmem:[%s4006_s10] sm:$0xff] }
 0x748   :  { %v1606_v9 = vmax.f32 %v1601_v24, 0.0  ;;  %v1602_v32 = vmax.f32 %v1575_v19, %v1594_v13  ;;  %v1638_v0 = vrot.slane %v3822_v20, 2  ;;  %v2378_v43 = vpop.f32.mrb[67].mxu1  ;;  %v1628_v25 = vrot.slane %v3822_v20, 1  ;;  %2554 = vmatprep.subr.bf16.mxu1 %v2744_v3  ;;  %v1814_v24 = vld [vmem:[%s4005_s9 + $0x38] sm:$0xff]  ;;  %v1816_v13 = vld [vmem:[%s4005_s9 + $0x48] sm:$0xff] }
 0x749   :  { %v1648_v8 = vrot.slane %v3822_v20, 3  ;;  %v1644_v6 = vsel %vm582_vm8, %v1636_v35, %v1637_v39  ;;  %v1634_v31 = vsel %vm551_vm10, %v1626_v22, %v1627_v17  ;;  %v1654_v1 = vsel %vm613_vm7, %v1646_v28, %v1647_v33  ;;  %v1820_v43 = vld [vmem:[%s4005_s9 + $0x68] sm:$0xff] }
 0x74a   :  { %v1615_v51 = vmul.f32 %v1611_v7, %v1606_v9  ;;  %v1607_v46 = vmax.f32 %v1602_v32, 0.0  ;;  %v1643_v48 = vsel %vm582_vm8, %v1637_v39, %v1638_v0  ;;  %v1633_v41 = vsel %vm551_vm10, %v1627_v17, %v1628_v25  ;;  %v1815_v39 = vld [vmem:[%s4005_s9 + $0x40] sm:$0xff]  ;;  %v1817_v9 = vld [vmem:[%s4005_s9 + $0x50] sm:$0xff]  ;;  %v1818_v32 = vld [vmem:[%s4005_s9 + $0x58] sm:$0xff] }
 0x74b   :  { %v2676_v30 = vpack.i.bf16 %v1643_v48, %v1644_v6  ;;  %v2671_v58 = vpack.i.bf16 %v1633_v41, %v1634_v31  ;;  %v1653_v26 = vsel %vm613_vm7, %v1647_v33, %v1648_v8  ;;  %2556 = vmatpush3.bf16.msra.mxu1 %v2555_v10  ;;  %v2558_v36 = vpack.c.bf16 %v1814_v24, %v1813_v62 }
 0x74c   :  { %v3840_v54 = vadd.f32 %v1620_v2, %v1615_v51  ;;  %v1616_v4 = vmul.f32 %v1611_v7, %v1607_v46  ;;  %v2681_v34 = vpack.i.bf16 %v1653_v26, %v1654_v1  ;;  %2557 = vmatprep.subr.bf16.mxu1 %v2744_v3  ;;  %v2561_v17 = vpack.c.bf16 %v1816_v13, %v1815_v39  ;;  %v1976_v39 = vld [vmem:[%s4007_s11] sm:$0xff] }
 0x74d   :  { %2677 = vrot.lane.b32.xlu1 %v2676_v30, %s2751_s27  ;;  %2672 = vrot.lane.b32.xlu0 %v2671_v58, %s2753_s7  ;;  %v1901_v13 = vsub.s32 6, %v2950_v47 }
 0x74e   :  { %v3846_v59 = vadd.f32 %v1620_v2, %v1616_v4  ;;  %v1639_v61 = vrot.slane %v3840_v54, 2  ;;  %v1629_v44 = vrot.slane %v3840_v54, 1  ;;  %v1649_v5 = vrot.slane %v3840_v54, 3 }
 0x74f   :  { %2559 = vmatpush3.bf16.msra.mxu1 %v2558_v36 }
 0x750   :  { %v1640_v63 = vrot.slane %v3846_v59, 2  ;;  %v1630_v57 = vrot.slane %v3846_v59, 1  ;;  %v1650_v55 = vrot.slane %v3846_v59, 3  ;;  %v1642_v49 = vsel %vm582_vm8, %v1638_v0, %v1639_v61  ;;  %2560 = vmatprep.subr.bf16.mxu1 %v2744_v3  ;;  %v1819_v0 = vld [vmem:[%s4005_s9 + $0x60] sm:$0xff] }
 0x751   :  { %2682 = vrot.lane.b32.xlu0 %v2681_v34, %s2750_s25  ;;  %v1632_v14 = vsel %vm551_vm10, %v1628_v25, %v1629_v44  ;;  %v1652_v7 = vsel %vm613_vm7, %v1648_v8, %v1649_v5  ;;  %v1821_v25 = vld [vmem:[%s4005_s9 + $0x70] sm:$0xff]  ;;  %v1822_v8 = vld [vmem:[%s4005_s9 + $0x78] sm:$0xff] }
 0x752   :  { %v1641_v19 = vsel %vm582_vm8, %v1639_v61, %v1640_v63  ;;  %v1631_v29 = vsel %vm551_vm10, %v1629_v44, %v1630_v57  ;;  %v1651_v27 = vsel %vm613_vm7, %v1649_v5, %v1650_v55  ;;  %v1635_v2 = vsel %vm551_vm10, %v1630_v57, %v1626_v22 }
 0x753   :  { %v2691_v52 = vpack.i.bf16 %v1641_v19, %v1642_v49  ;;  %v2686_v50 = vpack.i.bf16 %v1631_v29, %v1632_v14  ;;  %v2696_v42 = vpack.i.bf16 %v1651_v27, %v1652_v7  ;;  %v1645_v37 = vsel %vm582_vm8, %v1640_v63, %v1636_v35  ;;  %2562 = vmatpush3.bf16.msra.mxu1 %v2561_v17 }
 0x754   :  { %v1655_v21 = vsel %vm613_vm7, %v1650_v55, %v1646_v28  ;;  %v2564_v35 = vpack.c.bf16 %v1818_v32, %v1817_v9  ;;  %2563 = vmatprep.subr.bf16.mxu1 %v2744_v3  ;;  %v2567_v22 = vpack.c.bf16 %v1820_v43, %v1819_v0  ;;  %v2570_v51 = vpack.c.bf16 %v1822_v8, %v1821_v25 }
 0x755   :  { %2687 = vrot.lane.b32.xlu1 %v2686_v50, %s2753_s7  ;;  %2692 = vrot.lane.b32.xlu0 %v2691_v52, %s2751_s27  ;;  %v1902_v17 = vrot.slane %v3704_v53, %v1901_v13  ;;  %v1979_v0 = vsub.s32 7, %v2950_v47 }
 0x757   :  { %2565 = vmatpush3.bf16.msra.mxu1 %v2564_v35  ;;  %v1980_v43 = vrot.slane %v3704_v53, %v1979_v0 }
 0x758   :  { %2566 = vmatprep.subr.bf16.mxu1 %v2744_v3 }
 0x759   :  { %2697 = vrot.lane.b32.xlu1 %v2696_v42, %s2750_s25  ;;  %1669 = vrot.lane.b32.xlu0 %v1635_v2, %s2753_s7  ;;  %v1732_v2 = vld [vmem:[%s4004_s8] sm:$0x3] }
 0x75b   :  { %2568 = vmatpush3.bf16.msra.mxu1 %v2567_v22 }
 0x75c   :  { %2569 = vmatprep.subr.bf16.mxu1 %v2744_v3 }
 0x75d   :  { %1689 = vrot.lane.b32.xlu1 %v1645_v37, %s2751_s27  ;;  %1709 = vrot.lane.b32.xlu0 %v1655_v21, %s2750_s25  ;;  %v1898_v37 = vld [vmem:[%s4006_s10 + $0x8] sm:$0xff]  ;;  %s2754_s10 = smov [#allocation2]  }
 0x75e   :  { %v2573_v21 = vpack.c.bf16 %v1898_v37, %v1897_v16  ;;  %s2063_s17 = sshll.u32 %s2754_s10, 4  ;;  %s2064_s17 = int_to_ptr.vmem [resolvable:$true] %s2063_s17 }
 0x75f   :  { %2571 = vmatpush3.bf16.msra.mxu1 %v2570_v51  ;;  %s2720_s11 = scalar_lea.vmem %s2064_s17, 32  ;;  %p2725_p1 = scmp.lt.s32.totalorder %s2064_s17, %s2064_s17 }
 0x760   :  { %p2721_p0 = scmp.ne.s32.totalorder %s2064_s17, %s2720_s11  ;;  %p2726_p2 = scmp.lt.s32.totalorder %s2720_s11, %s2720_s11 }
 0x762   :  { %p2727_p3 = por %p2726_p2, %p2725_p1 }
 0x764   :  { %p2728_p4 = pnand %p2727_p3, %p2721_p0 }
 0x7bf   :  { %v2678_v46 = vpop.permute.xlu1 %2677  ;;  %v2673_v48 = vpop.permute.xlu0 %2672 }
 0x7c0   :  { %v2675_v6 = vunpack.i.h.bf16 %v2673_v48  ;;  %v2674_v30 = vunpack.i.l.bf16 %v2673_v48  ;;  %v2680_v41 = vunpack.i.h.bf16 %v2678_v46  ;;  %v2679_v31 = vunpack.i.l.bf16 %v2678_v46 }
 0x7c2   :  { %v1718_v33 = vsel %vm1716_vm15, %v3820_v45, %v2675_v6  ;;  %v1717_v4 = vsel %vm1716_vm15, %v3818_v15, %v2674_v30 }
 0x7c3   :  { %v2683_v58 = vpop.permute.xlu0 %2682  ;;  %v1722_v61 = vsel %vm946_vm12, %v1717_v4, %v2679_v31  ;;  %v1723_v44 = vsel %vm946_vm12, %v1718_v33, %v2680_v41 }
 0x7c4   :  { %v2685_v28 = vunpack.i.h.bf16 %v2683_v58  ;;  %v2684_v26 = vunpack.i.l.bf16 %v2683_v58 }
 0x7c6   :  { %v1727_v1 = vsel %vm247_vm4, %v1722_v61, %v2684_v26  ;;  %v1728_v34 = vsel %vm247_vm4, %v1723_v44, %v2685_v28 }
 0x7c7   :  { %v2688_v63 = vpop.permute.xlu1 %2687  ;;  %v2543_v57 = vpack.c.bf16 %v1728_v34, %v1727_v1  ;;  %v2693_v5 = vpop.permute.xlu0 %2692 }
 0x7c8   :  { %v2690_v55 = vunpack.i.h.bf16 %v2688_v63  ;;  %v2689_v19 = vunpack.i.l.bf16 %v2688_v63  ;;  %v2695_v45 = vunpack.i.h.bf16 %v2693_v5  ;;  %v2694_v49 = vunpack.i.l.bf16 %v2693_v5 }
 0x7c9   :  { %2544 = vmatpush3.bf16.msra.mxu0 %v2543_v57 }
 0x7ca   :  { %v1720_v15 = vsel %vm1716_vm15, %v3840_v54, %v2690_v55  ;;  %v1719_v29 = vsel %vm1716_vm15, %v3822_v20, %v2689_v19  ;;  %2545 = vmatprep.subr.bf16.mxu0 %v2744_v3 }
 0x7cb   :  { %v2698_v14 = vpop.permute.xlu1 %2697  ;;  %v1670_v52 = vpop.permute.xlu0 %1669  ;;  %v1724_v7 = vsel %vm946_vm12, %v1719_v29, %v2694_v49  ;;  %v1725_v38 = vsel %vm946_vm12, %v1720_v15, %v2695_v45 }
 0x7cc   :  { %v2700_v50 = vunpack.i.h.bf16 %v2698_v14  ;;  %v2699_v27 = vunpack.i.l.bf16 %v2698_v14  ;;  %v1721_v20 = vsel %vm1716_vm15, %v3846_v59, %v1670_v52 }
 0x7ce   :  { %v1729_v11 = vsel %vm247_vm4, %v1724_v7, %v2699_v27  ;;  %v1730_v18 = vsel %vm247_vm4, %v1725_v38, %v2700_v50 }
 0x7cf   :  { %v2546_v42 = vpack.c.bf16 %v1730_v18, %v1729_v11  ;;  %v1690_v54 = vpop.permute.xlu1 %1689  ;;  %v1710_v23 = vpop.permute.xlu0 %1709 }
 0x7d0   :  { %v1726_v60 = vsel %vm946_vm12, %v1721_v20, %v1690_v54 }
 0x7d1   :  { %2547 = vmatpush3.bf16.msra.mxu0 %v2546_v42  ;;  %v1731_v40 = vsel %vm247_vm4, %v1726_v60, %v1710_v23 }
 0x7d2   :  { %2387 = vmatprep.subr.mxu0 %v2748_v12 }
 0x7d5   :  { %2388 = vmatpush3.msra.mxu0 %v1731_v40 }
 0x7d6   :  { %2390 = vmatmul.mubr.msk.f32.vlgmr.msra.gmra.mrb[42].mxu0 %vm1733_vm0, %v1732_v2  ;;  %2572 = vmatprep.subr.bf16.mxu0 %v2744_v3  ;;  %v1825_v3 = vsub.s32 5, %v2950_v47 }
 0x7d7   :  { %2431 = vmatprep.mubr.msk.f32.mxu0 %vm2747_vm5, %v2748_v12  ;;  %2574 = vmatpush3.bf16.msra.mxu0 %v2573_v21 }
 0x7d8   :  { %2434 = vmatprep.subr.mxu0 %v2748_v12  ;;  %v1826_v10 = vrot.slane %v3704_v53, %v1825_v3 }
 0x8a9   :  { %v1803_v59 = vpop.f32.mrb[42].mxu0 }
 0x8aa   :  { %v2391_v56 = vpop.f32.mrb[43].mxu0  ;;  %2425 = vmatmul.mubr.f32.vlgmr.msra.gmra.mrb[68].mxu1 %v1803_v59 }
 0x97d   :  { %v1893_v62 = vpop.f32.mrb[68].mxu1 }
 0x97e   :  { %v1894_v24 = vadd.f32 %v1893_v62, %v1826_v10  ;;  %v2426_v36 = vpop.f32.mrb[69].mxu1 }
 0x980   :  { %2432 = vmatmul.mubr.msk.f32.vlgmr.msra.gmra.mrb[44].mxu0 %vm930_vm11, %v1894_v24 }
 0x981   :  { %2436 = vmatprep.mubr.msk.f32.mxu0 %vm2747_vm5, %v2748_v12  ;;  %2435 = vmatpush3.msra.mxu0 %v1976_v39 }
 0xa53   :  { %v1972_v9 = vpop.f32.mrb[44].mxu0 }
 0xa54   :  { %v1973_v32 = vadd.f32 %v1972_v9, %v1902_v17  ;;  %v2433_v35 = vpop.f32.mrb[45].mxu0 }
 0xa56   :  { %2437 = vmatmul.mubr.msk.f32.vlgmr.msra.gmra.mrb[46].mxu0 %vm1981_vm1, %v1973_v32 }
 0xb29   :  { %v2051_v12 = vpop.f32.mrb[46].mxu0 }
 0xb2a   :  { %v2052_v22 = vadd.f32 %v2051_v12, %v1980_v43  ;;  %v2438_v25 = vpop.f32.mrb[47].mxu0 }
 0xb2c   :  { %2056 = vst.msk [vmem:[#allocation2] sm:$0x3] %vm2055_vm2, %v2052_v22 }
 0xb2d   :  { %2731 = shalt.err (!%p2728_p4)
}
 0xb2e   :  { %s2732_s18 = scalar_lea.hbm %s4009_s13, 32 }
 0xb2f   :  { %p2733_p5 = scmp.ne.s32.totalorder %s4009_s13, %s2732_s18  ;;  %p2736_p6 = scmp.lt.u32.totalorder %s2732_s18, %s4009_s13 }
 0xb31   :  { %p2738_p7 = pnand %p2736_p6, %p2733_p5 }
 0xb33   :  { %2741 = shalt.err (!%p2738_p7)
}
 0xb34   :  { %2066 = dma.vmem_to_hbm [thread:$0]  %s2064_s17, 32, %s4009_s13, [#allocation3]  }
 0xb35   :  { %2742 = dma.done.wait [#allocation3], 32  }
 0xb36   :  { %2743 = vsyncadd [#allocation3], 4294967264 }
 0xb37   :  { %2070 = vsyncpa [#allocation3], 1 }

</bundles_post_ra>
